<compile_context>
chip_gen: v6e
topology: v6e:2x2x1
jax: 0.10.0
libtpu: 0.0.40
codegen_flags: <defaults>
</compile_context>

<pallas_src>
import functools

import numpy as np
import jax
import jax.numpy as jnp
from jax.experimental import pallas as pl
from jax.experimental.pallas import tpu as pltpu


def _volterra_vnn_kernel(s_ref, wmat_ref, fmat_ref, o_ref, g_ref):
    """Single-invocation kernel: s (B,N) f32, [U|H2] (N,2N) bf16,
    [W;h0;h1;bias] (N+24,wcol) f32  ->  logits (B, C_pad) f32."""
    B, N = s_ref.shape
    C_pad = o_ref.shape[1]

    # ---- GFT + first-order term (bf16 MXU operands, f32 accumulation). ----
    u_bf16 = wmat_ref[:, 0:N]                                     # (N, N) bf16
    s = s_ref[...]                                                # (B, N) f32
    s_hat = jnp.dot(s.astype(jnp.bfloat16), u_bf16,
                    preferred_element_type=jnp.float32)           # (B, N) f32

    h1 = fmat_ref[N + 8:N + 9, 0:N]                               # (1, N) f32
    z1 = jnp.dot((h1 * s_hat).astype(jnp.bfloat16), u_bf16,
                 preferred_element_type=jnp.float32)              # (B, N) f32

    # ---- Second-order (Volterra) term. ----
    # G[b*N + n, p] = U_ST[n, p] * s_hat[b, p]: B sublane broadcasts of the
    # lane-resident s_hat row, written as dense, aligned (N, N) bf16 blocks.
    for b in range(B):
        sh_b = s_hat[b:b + 1, :].astype(jnp.bfloat16)             # (1, N)
        g_ref[b * N:(b + 1) * N, :] = u_bf16 * sh_b               # (N, N) bf16

    # One wide weight-stationary matmul: (B*N, N) @ (N, N), H2 pushed once.
    h2_bf16 = wmat_ref[:, N:2 * N]                                # (N, N) bf16
    h2g = jnp.dot(g_ref[...], h2_bf16,
                  preferred_element_type=jnp.float32)             # (B*N, N) f32

    # z2[b, n] = sum_q G_b[n, q] * h2g_b[n, q] = diag(G_b @ h2g_b^T).
    # trans_b matmul + identity-masked sublane reduce -> (1, N) rows directly
    # in lane layout (no column->row relayout required anywhere).
    eye = (jax.lax.broadcasted_iota(jnp.int32, (N, N), 0) ==
           jax.lax.broadcasted_iota(jnp.int32, (N, N), 1)).astype(jnp.float32)
    z2_rows = []
    for b in range(B):
        gb = g_ref[b * N:(b + 1) * N, :]                          # (N, N) bf16
        hb = h2g[b * N:(b + 1) * N, :].astype(jnp.bfloat16)       # (N, N) bf16
        scores = jax.lax.dot_general(
            gb, hb, (((1,), (1,)), ((), ())),
            preferred_element_type=jnp.float32)                   # (N, N) f32
        z2_rows.append(jnp.sum(scores * eye, axis=0, keepdims=True))   # (1, N)
    z2 = jnp.concatenate(z2_rows, axis=0)                         # (B, N) f32

    # ---- Classifier head (f32 operands: see numerics note at top). ----
    h0 = fmat_ref[N:N + 1, 0:N]                                   # (1, N) f32
    out = h0 + z1 + z2                                            # (B, N) f32
    w = fmat_ref[0:N, 0:C_pad]                                    # (N, C_pad) f32
    bias = fmat_ref[N + 16:N + 17, 0:C_pad]                       # (1, C_pad) f32
    logits = jnp.dot(out, w, preferred_element_type=jnp.float32) + bias
    o_ref[...] = logits.astype(o_ref.dtype)                       # dense vst


def prepare_volterra_params(U_ST, h0, h1_full, H2_eff, W_cls, b_cls):
    """One-time parameter packing (hoisted out of the per-call hot path).

    Returns:
      wslab (N, 2N) bf16 : [ U_ST | H2_eff ]             (MXU operands)
      fslab (N+24, wcol) f32 : rows [0,N) = W_cls^T (lane padded to C_pad),
            row N = h0, row N+8 = full h_hat_1, row N+16 = classifier bias.
            Row offsets are 8-aligned bands so every in-kernel slice is tidy.
    """
    N = U_ST.shape[0]
    C = W_cls.shape[0]
    C_pad = ((C + 127) // 128) * 128
    wcol = max(N, C_pad)

    wslab = jnp.concatenate([U_ST.astype(jnp.float32),
                             H2_eff.astype(jnp.float32)], axis=1)
    wslab = wslab.astype(jnp.bfloat16)                            # (N, 2N)

    fslab = jnp.zeros((N + 24, wcol), jnp.float32)
    fslab = fslab.at[0:N, 0:C].set(W_cls.T.astype(jnp.float32))
    fslab = fslab.at[N, 0:N].set(h0.astype(jnp.float32))
    fslab = fslab.at[N + 8, 0:N].set(h1_full.astype(jnp.float32))
    fslab = fslab.at[N + 16, 0:C].set(b_cls.astype(jnp.float32))
    return wslab, fslab


@functools.partial(jax.jit, static_argnames=("num_classes",))
def graph_volterra_vnn_forward(s_batch, wslab, fslab, *, num_classes):
    """Full GraphVolterraVNN forward: one pallas_call, 3 input DMAs."""
    B, N = s_batch.shape
    C_pad = ((num_classes + 127) // 128) * 128

    cost = pl.CostEstimate(
        flops=2 * B * N * N * (2 * N + 2) + 2 * B * N * C_pad,
        transcendentals=0,
        bytes_accessed=(s_batch.size * 4 + wslab.size * 2
                        + fslab.size * 4 + B * C_pad * 4),
    )

    logits_pad = pl.pallas_call(
        _volterra_vnn_kernel,
        out_shape=jax.ShapeDtypeStruct((B, C_pad), jnp.float32),
        in_specs=[
            pl.BlockSpec(memory_space=pltpu.MemorySpace.VMEM),    # s (f32)
            pl.BlockSpec(memory_space=pltpu.MemorySpace.VMEM),    # [U|H2] bf16
            pl.BlockSpec(memory_space=pltpu.MemorySpace.VMEM),    # [W;h0;h1;b]
        ],
        out_specs=pl.BlockSpec(memory_space=pltpu.MemorySpace.VMEM),
        scratch_shapes=[pltpu.VMEM((B * N, N), jnp.bfloat16)],    # G
        cost_estimate=cost,
    )(s_batch.astype(jnp.float32), wslab, fslab)
    return logits_pad[:, :num_classes]


def reference_forward_np(S, U_ST, h0, h1_full, H2, W, b):
    """float64 numpy mirror of the PyTorch forward (source of truth)."""
    S = np.asarray(S, np.float64)
    U = np.asarray(U_ST, np.float64)
    h0 = np.asarray(h0, np.float64)
    h1 = np.asarray(h1_full, np.float64)
    H2 = np.asarray(H2, np.float64)
    W = np.asarray(W, np.float64)
    b = np.asarray(b, np.float64)

    s_hat = S @ U
    z1 = (h1[None, :] * s_hat) @ U
    z2 = np.stack([
        np.diag(U @ (H2 * np.outer(s_hat[i], s_hat[i])) @ U.T)
        for i in range(S.shape[0])
    ])
    out = h0[None, :] + z1 + z2
    return out @ W.T + b[None, :]


if __name__ == "__main__":
    # Shapes implied by the module: N_eff = N_spatial * N_temporal.
    N_s, N_t = 8, 16
    N_eff = N_s * N_t            # 128
    K_T1, K_T2 = 4, 6
    num_classes = 10
    B = 8

    key = jax.random.PRNGKey(0)
    ks = jax.random.split(key, 9)

    # Graph / temporal eigenbases (buffers in the PyTorch module).
    U_G = jnp.linalg.qr(jax.random.normal(ks[0], (N_s, N_s), jnp.float32))[0]
    U_P_T = jnp.linalg.qr(jax.random.normal(ks[1], (N_t, N_t), jnp.float32))[0]

    # Deterministic parameter init (same shapes/scales as the module __init__).
    h0 = 0.01 * jax.random.normal(ks[2], (N_eff,), jnp.float32)
    h_hat_1_coeffs = 0.01 * jax.random.normal(ks[3], (N_s, K_T1), jnp.float32)
    H_hat_2_S = 0.01 * jax.random.normal(ks[4], (N_s, N_s), jnp.float32)
    H_hat_2_T_coeffs = 0.01 * jax.random.normal(ks[5], (K_T2, K_T2), jnp.float32)
    W_cls = (1.0 / np.sqrt(N_eff)) * jax.random.normal(
        ks[6], (num_classes, N_eff), jnp.float32)
    b_cls = (1.0 / np.sqrt(N_eff)) * jax.random.normal(
        ks[7], (num_classes,), jnp.float32)

    # Input batch.
    S = jax.random.normal(ks[8], (B, N_eff), jnp.float32)

    # Buffer/parameter glue (done once, matches the module __init__/forward).
    U_ST = jnp.kron(U_G, U_P_T)                                   # (N_eff, N_eff)
    U_b1 = U_P_T[:, :K_T1]
    U_b2 = U_P_T[:, :K_T2]
    h1_full = (h_hat_1_coeffs @ U_b1.T).reshape(-1)               # (N_eff,)
    full_H2_T = U_b2 @ (H_hat_2_T_coeffs @ U_b2.T)                # (N_t, N_t)
    H2_eff = jnp.kron(H_hat_2_S, full_H2_T)                       # (N_eff, N_eff)

    # One-time packing into 2 parameter DMAs, then the jitted forward.
    wslab, fslab = prepare_volterra_params(U_ST, h0, h1_full, H2_eff,
                                           W_cls, b_cls)
    logits = graph_volterra_vnn_forward(S, wslab, fslab,
                                        num_classes=num_classes)
    logits = jax.block_until_ready(logits)

    # Re-validate bf16-operand numerics against a float64 reference (review
    # correctness concern #1): measured, not assumed.
    ref = reference_forward_np(S, U_ST, h0, h1_full, H2_eff, W_cls, b_cls)
    np.testing.assert_allclose(np.asarray(logits, np.float64), ref,
                               rtol=1e-3, atol=1e-4)

    print("KERNEL_OK")
</pallas_src>

<mosaic_0001>
module attributes {stable_mosaic.version = 11 : i64} {
  func.func @_volterra_vnn_kernel(%arg0: memref<8x128xf32, #tpu.memory_space<vmem>>, %arg1: memref<128x256xbf16, #tpu.memory_space<vmem>>, %arg2: memref<152x128xf32, #tpu.memory_space<vmem>>, %arg3: memref<8x128xf32, #tpu.memory_space<vmem>>, %arg4: memref<1024x128xbf16, #tpu.memory_space<vmem>>) attributes {dimension_semantics = [], scalar_prefetch = 0 : i64, scratch_operands = 1 : i64, tpu.core_type = #tpu.core_type<tc>} {
    %c0 = arith.constant 0 : index
    %c0_0 = arith.constant 0 : index
    %0 = vector.load %arg1[%c0, %c0_0] : memref<128x256xbf16, #tpu.memory_space<vmem>>, vector<128x128xbf16>
    %c0_1 = arith.constant 0 : index
    %c0_2 = arith.constant 0 : index
    %1 = vector.load %arg0[%c0_1, %c0_2] : memref<8x128xf32, #tpu.memory_space<vmem>>, vector<8x128xf32>
    %2 = arith.truncf %1 : vector<8x128xf32> to vector<8x128xbf16>
    %cst = arith.constant dense<0.000000e+00> : vector<8x128xf32>
    %3 = tpu.matmul %2, %0, %cst {dimension_numbers = #tpu.dot_dimension_numbers<[1], [0], [0], [1], [0, 0, 1, 1], [], []>} : vector<8x128xbf16>, vector<128x128xbf16>, vector<8x128xf32> -> vector<8x128xf32>
    %c136 = arith.constant 136 : index
    %c0_3 = arith.constant 0 : index
    %4 = vector.load %arg2[%c136, %c0_3] : memref<152x128xf32, #tpu.memory_space<vmem>>, vector<1x128xf32>
    %5 = vector.broadcast %4 : vector<1x128xf32> to vector<8x128xf32>
    %6 = arith.mulf %5, %3 : vector<8x128xf32>
    %7 = arith.truncf %6 : vector<8x128xf32> to vector<8x128xbf16>
    %cst_4 = arith.constant dense<0.000000e+00> : vector<8x128xf32>
    %8 = tpu.matmul %7, %0, %cst_4 {dimension_numbers = #tpu.dot_dimension_numbers<[1], [0], [0], [1], [0, 0, 1, 1], [], []>} : vector<8x128xbf16>, vector<128x128xbf16>, vector<8x128xf32> -> vector<8x128xf32>
    %9 = vector.extract_strided_slice %3 {offsets = [0, 0], sizes = [1, 128], strides = [1, 1]} : vector<8x128xf32> to vector<1x128xf32>
    %10 = arith.truncf %9 : vector<1x128xf32> to vector<1x128xbf16>
    %11 = vector.broadcast %10 : vector<1x128xbf16> to vector<128x128xbf16>
    %12 = arith.mulf %0, %11 : vector<128x128xbf16>
    %c0_5 = arith.constant 0 : index
    %c0_6 = arith.constant 0 : index
    %13 = vector.load %arg4[%c0_5, %c0_6] : memref<1024x128xbf16, #tpu.memory_space<vmem>>, vector<128x128xbf16>
    tpu.vector_store %arg4[%c0_5, %c0_6], %12 {strides = array<i32>} : memref<1024x128xbf16, #tpu.memory_space<vmem>>, vector<128x128xbf16>,
    %14 = vector.extract_strided_slice %3 {offsets = [1, 0], sizes = [1, 128], strides = [1, 1]} : vector<8x128xf32> to vector<1x128xf32>
    %15 = arith.truncf %14 : vector<1x128xf32> to vector<1x128xbf16>
    %16 = vector.broadcast %15 : vector<1x128xbf16> to vector<128x128xbf16>
    %17 = arith.mulf %0, %16 : vector<128x128xbf16>
    %c128 = arith.constant 128 : index
    %c0_7 = arith.constant 0 : index
    %18 = vector.load %arg4[%c128, %c0_7] : memref<1024x128xbf16, #tpu.memory_space<vmem>>, vector<128x128xbf16>
    tpu.vector_store %arg4[%c128, %c0_7], %17 {strides = array<i32>} : memref<1024x128xbf16, #tpu.memory_space<vmem>>, vector<128x128xbf16>,
    %19 = vector.extract_strided_slice %3 {offsets = [2, 0], sizes = [1, 128], strides = [1, 1]} : vector<8x128xf32> to vector<1x128xf32>
    %20 = arith.truncf %19 : vector<1x128xf32> to vector<1x128xbf16>
    %21 = vector.broadcast %20 : vector<1x128xbf16> to vector<128x128xbf16>
    %22 = arith.mulf %0, %21 : vector<128x128xbf16>
    %c256 = arith.constant 256 : index
    %c0_8 = arith.constant 0 : index
    %23 = vector.load %arg4[%c256, %c0_8] : memref<1024x128xbf16, #tpu.memory_space<vmem>>, vector<128x128xbf16>
    tpu.vector_store %arg4[%c256, %c0_8], %22 {strides = array<i32>} : memref<1024x128xbf16, #tpu.memory_space<vmem>>, vector<128x128xbf16>,
    %24 = vector.extract_strided_slice %3 {offsets = [3, 0], sizes = [1, 128], strides = [1, 1]} : vector<8x128xf32> to vector<1x128xf32>
    %25 = arith.truncf %24 : vector<1x128xf32> to vector<1x128xbf16>
    %26 = vector.broadcast %25 : vector<1x128xbf16> to vector<128x128xbf16>
    %27 = arith.mulf %0, %26 : vector<128x128xbf16>
    %c384 = arith.constant 384 : index
    %c0_9 = arith.constant 0 : index
    %28 = vector.load %arg4[%c384, %c0_9] : memref<1024x128xbf16, #tpu.memory_space<vmem>>, vector<128x128xbf16>
    tpu.vector_store %arg4[%c384, %c0_9], %27 {strides = array<i32>} : memref<1024x128xbf16, #tpu.memory_space<vmem>>, vector<128x128xbf16>,
    %29 = vector.extract_strided_slice %3 {offsets = [4, 0], sizes = [1, 128], strides = [1, 1]} : vector<8x128xf32> to vector<1x128xf32>
    %30 = arith.truncf %29 : vector<1x128xf32> to vector<1x128xbf16>
    %31 = vector.broadcast %30 : vector<1x128xbf16> to vector<128x128xbf16>
    %32 = arith.mulf %0, %31 : vector<128x128xbf16>
    %c512 = arith.constant 512 : index
    %c0_10 = arith.constant 0 : index
    %33 = vector.load %arg4[%c512, %c0_10] : memref<1024x128xbf16, #tpu.memory_space<vmem>>, vector<128x128xbf16>
    tpu.vector_store %arg4[%c512, %c0_10], %32 {strides = array<i32>} : memref<1024x128xbf16, #tpu.memory_space<vmem>>, vector<128x128xbf16>,
    %34 = vector.extract_strided_slice %3 {offsets = [5, 0], sizes = [1, 128], strides = [1, 1]} : vector<8x128xf32> to vector<1x128xf32>
    %35 = arith.truncf %34 : vector<1x128xf32> to vector<1x128xbf16>
    %36 = vector.broadcast %35 : vector<1x128xbf16> to vector<128x128xbf16>
    %37 = arith.mulf %0, %36 : vector<128x128xbf16>
    %c640 = arith.constant 640 : index
    %c0_11 = arith.constant 0 : index
    %38 = vector.load %arg4[%c640, %c0_11] : memref<1024x128xbf16, #tpu.memory_space<vmem>>, vector<128x128xbf16>
    tpu.vector_store %arg4[%c640, %c0_11], %37 {strides = array<i32>} : memref<1024x128xbf16, #tpu.memory_space<vmem>>, vector<128x128xbf16>,
    %39 = vector.extract_strided_slice %3 {offsets = [6, 0], sizes = [1, 128], strides = [1, 1]} : vector<8x128xf32> to vector<1x128xf32>
    %40 = arith.truncf %39 : vector<1x128xf32> to vector<1x128xbf16>
    %41 = vector.broadcast %40 : vector<1x128xbf16> to vector<128x128xbf16>
    %42 = arith.mulf %0, %41 : vector<128x128xbf16>
    %c768 = arith.constant 768 : index
    %c0_12 = arith.constant 0 : index
    %43 = vector.load %arg4[%c768, %c0_12] : memref<1024x128xbf16, #tpu.memory_space<vmem>>, vector<128x128xbf16>
    tpu.vector_store %arg4[%c768, %c0_12], %42 {strides = array<i32>} : memref<1024x128xbf16, #tpu.memory_space<vmem>>, vector<128x128xbf16>,
    %44 = vector.extract_strided_slice %3 {offsets = [7, 0], sizes = [1, 128], strides = [1, 1]} : vector<8x128xf32> to vector<1x128xf32>
    %45 = arith.truncf %44 : vector<1x128xf32> to vector<1x128xbf16>
    %46 = vector.broadcast %45 : vector<1x128xbf16> to vector<128x128xbf16>
    %47 = arith.mulf %0, %46 : vector<128x128xbf16>
    %c896 = arith.constant 896 : index
    %c0_13 = arith.constant 0 : index
    %48 = vector.load %arg4[%c896, %c0_13] : memref<1024x128xbf16, #tpu.memory_space<vmem>>, vector<128x128xbf16>
    tpu.vector_store %arg4[%c896, %c0_13], %47 {strides = array<i32>} : memref<1024x128xbf16, #tpu.memory_space<vmem>>, vector<128x128xbf16>,
    %c0_14 = arith.constant 0 : index
    %c128_15 = arith.constant 128 : index
    %49 = vector.load %arg1[%c0_14, %c128_15] : memref<128x256xbf16, #tpu.memory_space<vmem>>, vector<128x128xbf16>
    %c0_16 = arith.constant 0 : index
    %c0_17 = arith.constant 0 : index
    %50 = vector.load %arg4[%c0_16, %c0_17] : memref<1024x128xbf16, #tpu.memory_space<vmem>>, vector<1024x128xbf16>
    %cst_18 = arith.constant dense<0.000000e+00> : vector<1024x128xf32>
    %51 = tpu.matmul %50, %49, %cst_18 {dimension_numbers = #tpu.dot_dimension_numbers<[1], [0], [0], [1], [0, 0, 1, 1], [], []>} : vector<1024x128xbf16>, vector<128x128xbf16>, vector<1024x128xf32> -> vector<1024x128xf32>
    %52 = tpu.iota {dimensions = array<i32: 0>} : vector<128x128xi32>
    %53 = tpu.iota {dimensions = array<i32: 1>} : vector<128x128xi32>
    %54 = arith.cmpi eq, %52, %53 : vector<128x128xi32>
    %55 = arith.extui %54 : vector<128x128xi1> to vector<128x128xi32>
    %56 = arith.sitofp %55 : vector<128x128xi32> to vector<128x128xf32>
    %c0_19 = arith.constant 0 : index
    %c0_20 = arith.constant 0 : index
    %57 = vector.load %arg4[%c0_19, %c0_20] : memref<1024x128xbf16, #tpu.memory_space<vmem>>, vector<128x128xbf16>
    %58 = vector.extract_strided_slice %51 {offsets = [0, 0], sizes = [128, 128], strides = [1, 1]} : vector<1024x128xf32> to vector<128x128xf32>
    %59 = arith.truncf %58 : vector<128x128xf32> to vector<128x128xbf16>
    %cst_21 = arith.constant dense<0.000000e+00> : vector<128x128xf32>
    %60 = tpu.matmul %57, %59, %cst_21 {dimension_numbers = #tpu.dot_dimension_numbers<[1], [1], [0], [0], [0, 0, 1, 0], [], []>} : vector<128x128xbf16>, vector<128x128xbf16>, vector<128x128xf32> -> vector<128x128xf32>
    %61 = arith.mulf %60, %56 : vector<128x128xf32>
    %cst_22 = arith.constant dense<0.000000e+00> : vector<128xf32>
    %62 = vector.multi_reduction <add>, %61, %cst_22 [0] : vector<128x128xf32> to vector<128xf32>
    %63 = vector.shape_cast %62 : vector<128xf32> to vector<1x128xf32>
    %c128_23 = arith.constant 128 : index
    %c0_24 = arith.constant 0 : index
    %64 = vector.load %arg4[%c128_23, %c0_24] : memref<1024x128xbf16, #tpu.memory_space<vmem>>, vector<128x128xbf16>
    %65 = vector.extract_strided_slice %51 {offsets = [128, 0], sizes = [128, 128], strides = [1, 1]} : vector<1024x128xf32> to vector<128x128xf32>
    %66 = arith.truncf %65 : vector<128x128xf32> to vector<128x128xbf16>
    %cst_25 = arith.constant dense<0.000000e+00> : vector<128x128xf32>
    %67 = tpu.matmul %64, %66, %cst_25 {dimension_numbers = #tpu.dot_dimension_numbers<[1], [1], [0], [0], [0, 0, 1, 0], [], []>} : vector<128x128xbf16>, vector<128x128xbf16>, vector<128x128xf32> -> vector<128x128xf32>
    %68 = arith.mulf %67, %56 : vector<128x128xf32>
    %cst_26 = arith.constant dense<0.000000e+00> : vector<128xf32>
    %69 = vector.multi_reduction <add>, %68, %cst_26 [0] : vector<128x128xf32> to vector<128xf32>
    %70 = vector.shape_cast %69 : vector<128xf32> to vector<1x128xf32>
    %c256_27 = arith.constant 256 : index
    %c0_28 = arith.constant 0 : index
    %71 = vector.load %arg4[%c256_27, %c0_28] : memref<1024x128xbf16, #tpu.memory_space<vmem>>, vector<128x128xbf16>
    %72 = vector.extract_strided_slice %51 {offsets = [256, 0], sizes = [128, 128], strides = [1, 1]} : vector<1024x128xf32> to vector<128x128xf32>
    %73 = arith.truncf %72 : vector<128x128xf32> to vector<128x128xbf16>
    %cst_29 = arith.constant dense<0.000000e+00> : vector<128x128xf32>
    %74 = tpu.matmul %71, %73, %cst_29 {dimension_numbers = #tpu.dot_dimension_numbers<[1], [1], [0], [0], [0, 0, 1, 0], [], []>} : vector<128x128xbf16>, vector<128x128xbf16>, vector<128x128xf32> -> vector<128x128xf32>
    %75 = arith.mulf %74, %56 : vector<128x128xf32>
    %cst_30 = arith.constant dense<0.000000e+00> : vector<128xf32>
    %76 = vector.multi_reduction <add>, %75, %cst_30 [0] : vector<128x128xf32> to vector<128xf32>
    %77 = vector.shape_cast %76 : vector<128xf32> to vector<1x128xf32>
    %c384_31 = arith.constant 384 : index
    %c0_32 = arith.constant 0 : index
    %78 = vector.load %arg4[%c384_31, %c0_32] : memref<1024x128xbf16, #tpu.memory_space<vmem>>, vector<128x128xbf16>
    %79 = vector.extract_strided_slice %51 {offsets = [384, 0], sizes = [128, 128], strides = [1, 1]} : vector<1024x128xf32> to vector<128x128xf32>
    %80 = arith.truncf %79 : vector<128x128xf32> to vector<128x128xbf16>
    %cst_33 = arith.constant dense<0.000000e+00> : vector<128x128xf32>
    %81 = tpu.matmul %78, %80, %cst_33 {dimension_numbers = #tpu.dot_dimension_numbers<[1], [1], [0], [0], [0, 0, 1, 0], [], []>} : vector<128x128xbf16>, vector<128x128xbf16>, vector<128x128xf32> -> vector<128x128xf32>
    %82 = arith.mulf %81, %56 : vector<128x128xf32>
    %cst_34 = arith.constant dense<0.000000e+00> : vector<128xf32>
    %83 = vector.multi_reduction <add>, %82, %cst_34 [0] : vector<128x128xf32> to vector<128xf32>
    %84 = vector.shape_cast %83 : vector<128xf32> to vector<1x128xf32>
    %c512_35 = arith.constant 512 : index
    %c0_36 = arith.constant 0 : index
    %85 = vector.load %arg4[%c512_35, %c0_36] : memref<1024x128xbf16, #tpu.memory_space<vmem>>, vector<128x128xbf16>
    %86 = vector.extract_strided_slice %51 {offsets = [512, 0], sizes = [128, 128], strides = [1, 1]} : vector<1024x128xf32> to vector<128x128xf32>
    %87 = arith.truncf %86 : vector<128x128xf32> to vector<128x128xbf16>
    %cst_37 = arith.constant dense<0.000000e+00> : vector<128x128xf32>
    %88 = tpu.matmul %85, %87, %cst_37 {dimension_numbers = #tpu.dot_dimension_numbers<[1], [1], [0], [0], [0, 0, 1, 0], [], []>} : vector<128x128xbf16>, vector<128x128xbf16>, vector<128x128xf32> -> vector<128x128xf32>
    %89 = arith.mulf %88, %56 : vector<128x128xf32>
    %cst_38 = arith.constant dense<0.000000e+00> : vector<128xf32>
    %90 = vector.multi_reduction <add>, %89, %cst_38 [0] : vector<128x128xf32> to vector<128xf32>
    %91 = vector.shape_cast %90 : vector<128xf32> to vector<1x128xf32>
    %c640_39 = arith.constant 640 : index
    %c0_40 = arith.constant 0 : index
    %92 = vector.load %arg4[%c640_39, %c0_40] : memref<1024x128xbf16, #tpu.memory_space<vmem>>, vector<128x128xbf16>
    %93 = vector.extract_strided_slice %51 {offsets = [640, 0], sizes = [128, 128], strides = [1, 1]} : vector<1024x128xf32> to vector<128x128xf32>
    %94 = arith.truncf %93 : vector<128x128xf32> to vector<128x128xbf16>
    %cst_41 = arith.constant dense<0.000000e+00> : vector<128x128xf32>
    %95 = tpu.matmul %92, %94, %cst_41 {dimension_numbers = #tpu.dot_dimension_numbers<[1], [1], [0], [0], [0, 0, 1, 0], [], []>} : vector<128x128xbf16>, vector<128x128xbf16>, vector<128x128xf32> -> vector<128x128xf32>
    %96 = arith.mulf %95, %56 : vector<128x128xf32>
    %cst_42 = arith.constant dense<0.000000e+00> : vector<128xf32>
    %97 = vector.multi_reduction <add>, %96, %cst_42 [0] : vector<128x128xf32> to vector<128xf32>
    %98 = vector.shape_cast %97 : vector<128xf32> to vector<1x128xf32>
    %c768_43 = arith.constant 768 : index
    %c0_44 = arith.constant 0 : index
    %99 = vector.load %arg4[%c768_43, %c0_44] : memref<1024x128xbf16, #tpu.memory_space<vmem>>, vector<128x128xbf16>
    %100 = vector.extract_strided_slice %51 {offsets = [768, 0], sizes = [128, 128], strides = [1, 1]} : vector<1024x128xf32> to vector<128x128xf32>
    %101 = arith.truncf %100 : vector<128x128xf32> to vector<128x128xbf16>
    %cst_45 = arith.constant dense<0.000000e+00> : vector<128x128xf32>
    %102 = tpu.matmul %99, %101, %cst_45 {dimension_numbers = #tpu.dot_dimension_numbers<[1], [1], [0], [0], [0, 0, 1, 0], [], []>} : vector<128x128xbf16>, vector<128x128xbf16>, vector<128x128xf32> -> vector<128x128xf32>
    %103 = arith.mulf %102, %56 : vector<128x128xf32>
    %cst_46 = arith.constant dense<0.000000e+00> : vector<128xf32>
    %104 = vector.multi_reduction <add>, %103, %cst_46 [0] : vector<128x128xf32> to vector<128xf32>
    %105 = vector.shape_cast %104 : vector<128xf32> to vector<1x128xf32>
    %c896_47 = arith.constant 896 : index
    %c0_48 = arith.constant 0 : index
    %106 = vector.load %arg4[%c896_47, %c0_48] : memref<1024x128xbf16, #tpu.memory_space<vmem>>, vector<128x128xbf16>
    %107 = vector.extract_strided_slice %51 {offsets = [896, 0], sizes = [128, 128], strides = [1, 1]} : vector<1024x128xf32> to vector<128x128xf32>
    %108 = arith.truncf %107 : vector<128x128xf32> to vector<128x128xbf16>
    %cst_49 = arith.constant dense<0.000000e+00> : vector<128x128xf32>
    %109 = tpu.matmul %106, %108, %cst_49 {dimension_numbers = #tpu.dot_dimension_numbers<[1], [1], [0], [0], [0, 0, 1, 0], [], []>} : vector<128x128xbf16>, vector<128x128xbf16>, vector<128x128xf32> -> vector<128x128xf32>
    %110 = arith.mulf %109, %56 : vector<128x128xf32>
    %cst_50 = arith.constant dense<0.000000e+00> : vector<128xf32>
    %111 = vector.multi_reduction <add>, %110, %cst_50 [0] : vector<128x128xf32> to vector<128xf32>
    %112 = vector.shape_cast %111 : vector<128xf32> to vector<1x128xf32>
    %113 = tpu.concatenate %63, %70, %77, %84, %91, %98, %105, %112 in 0 : vector<1x128xf32>, vector<1x128xf32>, vector<1x128xf32>, vector<1x128xf32>, vector<1x128xf32>, vector<1x128xf32>, vector<1x128xf32>, vector<1x128xf32> -> vector<8x128xf32>
    %c128_51 = arith.constant 128 : index
    %c0_52 = arith.constant 0 : index
    %114 = vector.load %arg2[%c128_51, %c0_52] : memref<152x128xf32, #tpu.memory_space<vmem>>, vector<1x128xf32>
    %115 = vector.broadcast %114 : vector<1x128xf32> to vector<8x128xf32>
    %116 = arith.addf %115, %8 : vector<8x128xf32>
    %117 = arith.addf %116, %113 : vector<8x128xf32>
    %c0_53 = arith.constant 0 : index
    %c0_54 = arith.constant 0 : index
    %118 = vector.load %arg2[%c0_53, %c0_54] : memref<152x128xf32, #tpu.memory_space<vmem>>, vector<128x128xf32>
    %c144 = arith.constant 144 : index
    %c0_55 = arith.constant 0 : index
    %119 = vector.load %arg2[%c144, %c0_55] : memref<152x128xf32, #tpu.memory_space<vmem>>, vector<1x128xf32>
    %cst_56 = arith.constant dense<0.000000e+00> : vector<8x128xf32>
    %120 = tpu.matmul %117, %118, %cst_56 {dimension_numbers = #tpu.dot_dimension_numbers<[1], [0], [0], [1], [0, 0, 1, 1], [], []>} : vector<8x128xf32>, vector<128x128xf32>, vector<8x128xf32> -> vector<8x128xf32>
    %121 = vector.broadcast %119 : vector<1x128xf32> to vector<8x128xf32>
    %122 = arith.addf %120, %121 : vector<8x128xf32>
    %c0_57 = arith.constant 0 : index
    %c0_58 = arith.constant 0 : index
    %123 = vector.load %arg3[%c0_57, %c0_58] : memref<8x128xf32, #tpu.memory_space<vmem>>, vector<8x128xf32>
    tpu.vector_store %arg3[%c0_57, %c0_58], %122 {strides = array<i32>} : memref<8x128xf32, #tpu.memory_space<vmem>>, vector<8x128xf32>,
    return
  }
}

</mosaic_0001>

<bundles_post_ra>
// kernel: graph_volterra_vnn_forward.1
= control target key start
LH: loop header
LB: loop body
LE: loop exit
PB: predicated region body
PF: predicated region fallthrough
CT: control target
= control target key end

     0   :  { %8 = vsyncpa [#allocation4], 0  ;;  %s5867_s0 = inlined_call_operand.hbm [shape: f32[8,128], index: 0, kind: input, shape index: {}]   ;;  %s5868_s1 = inlined_call_operand.hbm [shape: bf16[128,256], index: 1, kind: input, shape index: {}]   ;;  %s5869_s2 = inlined_call_operand.hbm [shape: f32[152,128], index: 2, kind: input, shape index: {}]   ;;  %s5870_s3 = inlined_call_operand.hbm [shape: f32[8,128], index: 3, kind: output, shape index: {}]  }
   0x1   :  { %9 = vsyncpa [#allocation7], 0 }
   0x2   :  { %10 = vsyncpa [#allocation5], 0  ;;  %s4994_s12 = smov [#allocation6]  }
   0x3   :  { %s26_s13 = sshll.u32 %s4994_s12, 4  ;;  %s27_s13 = int_to_ptr.vmem [resolvable:$true] %s26_s13 }
   0x4   :  { %s4916_s14 = scalar_lea.vmem %s27_s13, 2048  ;;  %p4921_p1 = scmp.lt.s32.totalorder %s27_s13, %s27_s13 }
   0x5   :  { %p4917_p0 = scmp.ne.s32.totalorder %s27_s13, %s4916_s14  ;;  %p4922_p2 = scmp.lt.s32.totalorder %s4916_s14, %s4916_s14 }
   0x7   :  { %p4923_p3 = por %p4922_p2, %p4921_p1 }
   0x9   :  { %p4924_p4 = pnand %p4923_p3, %p4917_p0 }
   0xb   :  { %4927 = shalt.err (!%p4924_p4)
}
   0xc   :  { %s4995_s15 = smov 128   ;;  %s4996_s16 = smov 8  }
   0xd   :  { %32 = dma.hbm_to_vmem [thread:$0]  %s5868_s1, 2048, %s27_s13, [#allocation7], %s4995_s15, %s4995_s15, %s4996_s16  }
   0xe   :  { %s4997_s19 = smov [#allocation3]   ;;  %s4998_s21 = smov [#allocation8]  }
   0xf   :  { %s17_s20 = sshll.u32 %s4997_s19, 4  ;;  %s38_s22 = sshll.u32 %s4998_s21, 4  ;;  %s18_s20 = int_to_ptr.vmem [resolvable:$true] %s17_s20  ;;  %s39_s22 = int_to_ptr.vmem [resolvable:$true] %s38_s22 }
  0x10   :  { %s4936_s23 = scalar_lea.vmem %s18_s20, 128  ;;  %p4941_p6 = scmp.lt.s32.totalorder %s18_s20, %s18_s20 }
  0x11   :  { %p4937_p5 = scmp.ne.s32.totalorder %s18_s20, %s4936_s23  ;;  %p4942_p7 = scmp.lt.s32.totalorder %s4936_s23, %s4936_s23 }
  0x13   :  { %p4943_p8 = por %p4942_p7, %p4941_p6 }
  0x15   :  { %p4944_p9 = pnand %p4943_p8, %p4937_p5 }
  0x17   :  { %4947 = shalt.err (!%p4944_p9)
}
  0x18   :  { %20 = dma.hbm_to_vmem [thread:$0]  %s5867_s0, 128, %s18_s20, [#allocation4]  }
  0x19   :  { %s4956_s26 = scalar_lea.vmem %s39_s22, 2432  ;;  %p4961_p11 = scmp.lt.s32.totalorder %s39_s22, %s39_s22 }
  0x1a   :  { %p4957_p10 = scmp.ne.s32.totalorder %s39_s22, %s4956_s26  ;;  %p4962_p12 = scmp.lt.s32.totalorder %s4956_s26, %s4956_s26 }
  0x1c   :  { %p4963_p13 = por %p4962_p12, %p4961_p11 }
  0x1e   :  { %p4964_p0 = pnand %p4963_p13, %p4957_p10 }
  0x20   :  { %4967 = shalt.err (!%p4964_p0)
}
  0x21   :  { %44 = dma.hbm_to_vmem [thread:$0]  %s5869_s2, 2432, %s39_s22, [#allocation7], %s4995_s15, %s4995_s15, %s4996_s16  }
  0x22   :  { %4988 = dma.done.wait [#allocation4], 128  }
  0x23   :  { %4989 = vsyncadd [#allocation4], 4294967168 }
  0x24   :  { %4990 = dma.done.wait [#allocation7], 4480  }
  0x25   :  { %4991 = vsyncadd [#allocation7], 4294962816  ;;  %v4999_v0 = vmov 0.0   ;;  %vm5000_vm0 = vmmov 0   ;;  %v5037_v1 = vld [vmem:[#allocation6 + $0x70] sm:$0xf]  ;;  %v212_v35 = vlaneseq }
  0x26   :  { %4281 = vmatprep.subr.bf16.mxu0 %v4999_v0  ;;  %4297 = vmatprep.mubr.msk.bf16.mxu0 %vm5000_vm0, %v4999_v0  ;;  %v5039_v2 = vld [vmem:[#allocation6 + $0x78] sm:$0xf]  ;;  %v5041_v3 = vld [vmem:[#allocation6 + $0x60] sm:$0xf]  ;;  %v5045_v5 = vld [vmem:[#allocation6 + $0x68] sm:$0xf] }
  0x27   :  { %4301 = vmatprep.subr.bf16.mxu1 %v4999_v0  ;;  %4317 = vmatprep.mubr.msk.bf16.mxu1 %vm5000_vm0, %v4999_v0  ;;  %v3443_v4 = vcombine.low %v5037_v1, %v5039_v2  ;;  %v3442_v6 = vcombine.low %v5041_v3, %v5045_v5  ;;  %v5050_v7 = vld [vmem:[#allocation6 + $0x50] sm:$0xf]  ;;  %v5052_v8 = vld [vmem:[#allocation6 + $0x58] sm:$0xf]  ;;  %v5055_v9 = vld [vmem:[#allocation6 + $0x40] sm:$0xf] }
  0x28   :  { %v3441_v10 = vcombine.low %v5050_v7, %v5052_v8  ;;  %v5059_v11 = vld [vmem:[#allocation6 + $0x48] sm:$0xf]  ;;  %v5066_v13 = vld [vmem:[#allocation6 + $0x30] sm:$0xf]  ;;  %v5068_v14 = vld [vmem:[#allocation6 + $0x38] sm:$0xf] }
  0x29   :  { %4282 = vmatpush3.bf16.msra.mxu0 %v3443_v4  ;;  %4302 = vmatpush3.bf16.msra.mxu1 %v3443_v4  ;;  %v3440_v12 = vcombine.low %v5055_v9, %v5059_v11  ;;  %v3439_v15 = vcombine.low %v5066_v13, %v5068_v14  ;;  %v5074_v16 = vld [vmem:[#allocation6 + $0x20] sm:$0xf]  ;;  %v5076_v17 = vld [vmem:[#allocation6 + $0x28] sm:$0xf]  ;;  %v5082_v19 = vld [vmem:[#allocation6 + $0x10] sm:$0xf] }
  0x2a   :  { %4283 = vmatprep.subr.bf16.mxu0 %v4999_v0  ;;  %4303 = vmatprep.subr.bf16.mxu1 %v4999_v0  ;;  %v3438_v18 = vcombine.low %v5074_v16, %v5076_v17  ;;  %v5084_v20 = vld [vmem:[#allocation6 + $0x18] sm:$0xf]  ;;  %v5090_v22 = vld [vmem:[#allocation6] sm:$0xf]  ;;  %v5092_v23 = vld [vmem:[#allocation6 + $0x8] sm:$0xf] }
  0x2b   :  { %v3437_v21 = vcombine.low %v5082_v19, %v5084_v20  ;;  %v3436_v24 = vcombine.low %v5090_v22, %v5092_v23  ;;  %v71_v25 = vld [vmem:[#allocation3] sm:$0xff]  ;;  %v4773_v28 = vld [vmem:[#allocation6 + $0x64] ss:$8 sps:$4 sm:$0xff]   ;;  %v5100_v36 = vshrl.u32 %v212_v35, 7  ;;  %v3444_v37 = vld [vmem:[#allocation8 + $0x88] ss:$0 sm:$0xff] }
  0x2c   :  { %v4772_v26 = vld [vmem:[#allocation6 + $0x74] ss:$8 sps:$4 sm:$0xff]   ;;  %v72_v27 = vpack.c.bf16 %v71_v25, %v71_v25  ;;  %v4775_v30 = vld [vmem:[#allocation6 + $0x44] ss:$8 sps:$4 sm:$0xff]   ;;  %s5001_s0 = smov [#allocation9]  }
  0x2d   :  { %4284 = vmatpush3.bf16.msra.mxu0 %v3442_v6  ;;  %4304 = vmatpush3.bf16.msra.mxu1 %v3442_v6  ;;  %v4774_v29 = vld [vmem:[#allocation6 + $0x54] ss:$8 sps:$4 sm:$0xff]   ;;  %v4777_v32 = vld [vmem:[#allocation6 + $0x24] ss:$8 sps:$4 sm:$0xff]   ;;  %v214_v39 = vsub.s32 0, %v5100_v36  ;;  %v297_v42 = vsub.s32 1, %v5100_v36 }
  0x2e   :  { %4285 = vmatprep.subr.bf16.mxu0 %v4999_v0  ;;  %4305 = vmatprep.subr.bf16.mxu1 %v4999_v0  ;;  %v4776_v31 = vld [vmem:[#allocation6 + $0x34] ss:$8 sps:$4 sm:$0xff]   ;;  %v4779_v34 = vld [vmem:[#allocation6 + $0x4] ss:$8 sps:$4 sm:$0xff]   ;;  %v377_v43 = vsub.s32 2, %v5100_v36  ;;  %v457_v44 = vsub.s32 3, %v5100_v36 }
  0x2f   :  { %v4778_v33 = vld [vmem:[#allocation6 + $0x14] ss:$8 sps:$4 sm:$0xff]   ;;  %s3426_s2 = sshll.u32 %s5001_s0, 4  ;;  %s3427_s2 = int_to_ptr.vmem [resolvable:$true] %s3426_s2 }
  0x30   :  { %s4968_s28 = scalar_lea.vmem %s3427_s2, 128  ;;  %p4973_p2 = scmp.lt.s32.totalorder %s3427_s2, %s3427_s2 }
  0x31   :  { %4286 = vmatpush3.bf16.msra.mxu0 %v3441_v10  ;;  %4306 = vmatpush3.bf16.msra.mxu1 %v3441_v10  ;;  %p4969_p1 = scmp.ne.s32.totalorder %s3427_s2, %s4968_s28  ;;  %p4974_p3 = scmp.lt.s32.totalorder %s4968_s28, %s4968_s28 }
  0x32   :  { %4287 = vmatprep.subr.bf16.mxu0 %v4999_v0  ;;  %4307 = vmatprep.subr.bf16.mxu1 %v4999_v0 }
  0x33   :  { %p4975_p4 = por %p4974_p3, %p4973_p2 }
  0x35   :  { %4288 = vmatpush3.bf16.msra.mxu0 %v3440_v12  ;;  %4308 = vmatpush3.bf16.msra.mxu1 %v3440_v12  ;;  %p4976_p5 = pnand %p4975_p4, %p4969_p1 }
  0x36   :  { %4289 = vmatprep.subr.bf16.mxu0 %v4999_v0  ;;  %4309 = vmatprep.subr.bf16.mxu1 %v4999_v0 }
  0x39   :  { %4290 = vmatpush3.bf16.msra.mxu0 %v3439_v15  ;;  %4310 = vmatpush3.bf16.msra.mxu1 %v3439_v15 }
  0x3a   :  { %4291 = vmatprep.subr.bf16.mxu0 %v4999_v0  ;;  %4311 = vmatprep.subr.bf16.mxu1 %v4999_v0 }
  0x3d   :  { %4292 = vmatpush3.bf16.msra.mxu0 %v3438_v18  ;;  %4312 = vmatpush3.bf16.msra.mxu1 %v3438_v18 }
  0x3e   :  { %4293 = vmatprep.subr.bf16.mxu0 %v4999_v0  ;;  %4313 = vmatprep.subr.bf16.mxu1 %v4999_v0 }
  0x41   :  { %4294 = vmatpush3.bf16.msra.mxu0 %v3437_v21  ;;  %4314 = vmatpush3.bf16.msra.mxu1 %v3437_v21 }
  0x42   :  { %4295 = vmatprep.subr.bf16.mxu0 %v4999_v0  ;;  %4315 = vmatprep.subr.bf16.mxu1 %v4999_v0 }
  0x45   :  { %4296 = vmatpush3.bf16.msra.mxu0 %v3436_v24  ;;  %4316 = vmatpush3.bf16.msra.mxu1 %v3436_v24 }
  0x46   :  { %4321 = vmatprep.subr.bf16.mxu0 %v4772_v26 }
  0x48   :  { %4298 = vmatmul.mubr.bf16.vlgmr.msra.gmra.mxu0 %v72_v27 }
  0x49   :  { %4322 = vmatpush3.bf16.msra.mxu0 %v4772_v26 }
  0x4a   :  { %4323 = vmatprep.subr.bf16.mxu0 %v4773_v28 }
  0x4d   :  { %4324 = vmatpush3.bf16.msra.mxu0 %v4773_v28 }
  0x4e   :  { %4325 = vmatprep.subr.bf16.mxu0 %v4774_v29 }
  0x51   :  { %4326 = vmatpush3.bf16.msra.mxu0 %v4774_v29 }
  0x52   :  { %4327 = vmatprep.subr.bf16.mxu0 %v4775_v30 }
  0x55   :  { %4328 = vmatpush3.bf16.msra.mxu0 %v4775_v30 }
  0x56   :  { %4329 = vmatprep.subr.bf16.mxu0 %v4776_v31 }
  0x59   :  { %4330 = vmatpush3.bf16.msra.mxu0 %v4776_v31 }
  0x5a   :  { %4331 = vmatprep.subr.bf16.mxu0 %v4777_v32 }
  0x5d   :  { %4332 = vmatpush3.bf16.msra.mxu0 %v4777_v32 }
  0x5e   :  { %4333 = vmatprep.subr.bf16.mxu0 %v4778_v33 }
  0x61   :  { %4334 = vmatpush3.bf16.msra.mxu0 %v4778_v33 }
  0x62   :  { %4335 = vmatprep.subr.bf16.mxu0 %v4779_v34 }
  0x65   :  { %4336 = vmatpush3.bf16.msra.mxu0 %v4779_v34 }
 0x108   :  { %v155_v38 = vpop.f32.mrf.mxu0 }
 0x109   :  { %v166_v40 = vmul.f32 %v3444_v37, %v155_v38  ;;  %v208_v41 = vpack.c.bf16 %v155_v38, %v155_v38 }
 0x10a   :  { %v4299_v45 = vpop.f32.mrf.mxu0 }
 0x10b   :  { %v167_v46 = vpack.c.bf16 %v166_v40, %v166_v40  ;;  %v210_v47 = vpack.i.b16 %v208_v41, %v208_v41  ;;  %v252_v48 = vshrl.u32 %v208_v41, 16 }
 0x10c   :  { %v158_v49 = vpop.f32.mrf.mxu0 }
 0x10d   :  { %v215_v50 = vrot.slane %v210_v47, %v214_v39  ;;  %v253_v51 = vpack.i.b16 %v252_v48, %v252_v48  ;;  %v298_v52 = vrot.slane %v210_v47, %v297_v42  ;;  %v378_v53 = vrot.slane %v210_v47, %v377_v43  ;;  %4318 = vmatmul.mubr.bf16.vlgmr.msra.gmra.mxu1 %v167_v46 }
 0x10e   :  { %v458_v54 = vrot.slane %v210_v47, %v457_v44  ;;  %v4300_v55 = vpop.f32.mrf.mxu0 }
 0x10f   :  { %v3445_v56 = vcombine.low %v215_v50, %v215_v50  ;;  %v258_v57 = vrot.slane %v253_v51, %v214_v39  ;;  %v5106_v58 = vcombine.low %v298_v52, %v298_v52  ;;  %v338_v59 = vrot.slane %v253_v51, %v297_v42 }
 0x110   :  { %v5108_v60 = vcombine.low %v378_v53, %v378_v53  ;;  %v418_v61 = vrot.slane %v253_v51, %v377_v43  ;;  %v5110_v62 = vcombine.low %v458_v54, %v458_v54  ;;  %v498_v63 = vrot.slane %v253_v51, %v457_v44 }
 0x111   :  { %v5112_v4 = vcombine.low %v258_v57, %v258_v57  ;;  %v5114_v6 = vcombine.low %v338_v59, %v338_v59  ;;  %v220_v10 = vmul.bf16 %v3445_v56, %v5090_v22  ;;  %v221_v12 = vmul.bf16 %v3445_v56, %v5092_v23 }
 0x112   :  { %v5118_v15 = vcombine.low %v418_v61, %v418_v61  ;;  %v5120_v18 = vcombine.low %v498_v63, %v498_v63  ;;  %v222_v21 = vmul.bf16 %v3445_v56, %v5082_v19  ;;  %v223_v24 = vmul.bf16 %v3445_v56, %v5084_v20 }
 0x113   :  { %v3919_v25 = vcombine.low %v220_v10, %v221_v12  ;;  %v224_v26 = vmul.bf16 %v3445_v56, %v5074_v16  ;;  %v225_v27 = vmul.bf16 %v3445_v56, %v5076_v17  ;;  %v226_v28 = vmul.bf16 %v3445_v56, %v5066_v13 }
 0x114   :  { %v3920_v29 = vcombine.low %v222_v21, %v223_v24  ;;  %v227_v30 = vmul.bf16 %v3445_v56, %v5068_v14  ;;  %v228_v31 = vmul.bf16 %v3445_v56, %v5055_v9  ;;  %v229_v32 = vmul.bf16 %v3445_v56, %v5059_v11 }
 0x115   :  { %3603 = vst [vmem:[#allocation2] sm:$0xff] %v3919_v25   ;;  %v3922_v33 = vcombine.low %v224_v26, %v225_v27  ;;  %v230_v34 = vmul.bf16 %v3445_v56, %v5050_v7  ;;  %v231_v37 = vmul.bf16 %v3445_v56, %v5052_v8  ;;  %v232_v38 = vmul.bf16 %v3445_v56, %v5041_v3 }
 0x116   :  { %3921 = vst [vmem:[#allocation2 + $0x8] sm:$0xff] %v3920_v29   ;;  %v3924_v39 = vcombine.low %v226_v28, %v227_v30  ;;  %v3926_v40 = vcombine.low %v228_v31, %v229_v32  ;;  %v233_v41 = vmul.bf16 %v3445_v56, %v5045_v5  ;;  %v234_v42 = vmul.bf16 %v3445_v56, %v5037_v1 }
 0x117   :  { %3923 = vst [vmem:[#allocation2 + $0x10] sm:$0xff] %v3922_v33   ;;  %v3928_v43 = vcombine.low %v230_v34, %v231_v37  ;;  %v235_v44 = vmul.bf16 %v3445_v56, %v5039_v2  ;;  %v263_v45 = vmul.bf16 %v5112_v4, %v5090_v22  ;;  %v264_v46 = vmul.bf16 %v5112_v4, %v5092_v23 }
 0x118   :  { %3925 = vst [vmem:[#allocation2 + $0x18] sm:$0xff] %v3924_v39   ;;  %3927 = vst [vmem:[#allocation2 + $0x20] sm:$0xff] %v3926_v40   ;;  %v3930_v47 = vcombine.low %v232_v38, %v233_v41  ;;  %v265_v48 = vmul.bf16 %v5112_v4, %v5082_v19  ;;  %v266_v49 = vmul.bf16 %v5112_v4, %v5084_v20 }
 0x119   :  { %v267_v50 = vmul.bf16 %v5112_v4, %v5074_v16  ;;  %3929 = vst [vmem:[#allocation2 + $0x28] sm:$0xff] %v3928_v43   ;;  %v3932_v51 = vcombine.low %v234_v42, %v235_v44  ;;  %v3934_v52 = vcombine.low %v263_v45, %v264_v46  ;;  %v268_v53 = vmul.bf16 %v5112_v4, %v5076_v17 }
 0x11a   :  { %v269_v54 = vmul.bf16 %v5112_v4, %v5066_v13  ;;  %3931 = vst [vmem:[#allocation2 + $0x30] sm:$0xff] %v3930_v47   ;;  %v3936_v55 = vcombine.low %v265_v48, %v266_v49  ;;  %v270_v56 = vmul.bf16 %v5112_v4, %v5068_v14  ;;  %v271_v57 = vmul.bf16 %v5112_v4, %v5055_v9 }
 0x11b   :  { %v272_v59 = vmul.bf16 %v5112_v4, %v5059_v11  ;;  %3933 = vst [vmem:[#allocation2 + $0x38] sm:$0xff] %v3932_v51   ;;  %3935 = vst [vmem:[#allocation2 + $0x40] sm:$0xff] %v3934_v52   ;;  %v3938_v61 = vcombine.low %v267_v50, %v268_v53  ;;  %v273_v63 = vmul.bf16 %v5112_v4, %v5050_v7 }
 0x11c   :  { %v274_v10 = vmul.bf16 %v5112_v4, %v5052_v8  ;;  %v275_v12 = vmul.bf16 %v5112_v4, %v5041_v3  ;;  %v4780_v21 = vld [vmem:[#allocation2] sm:$0xff]   ;;  %3937 = vst [vmem:[#allocation2 + $0x48] sm:$0xff] %v3936_v55   ;;  %v3940_v24 = vcombine.low %v269_v54, %v270_v56  ;;  %v276_v26 = vmul.bf16 %v5112_v4, %v5045_v5 }
 0x11d   :  { %v3942_v25 = vcombine.low %v271_v57, %v272_v59  ;;  %v277_v27 = vmul.bf16 %v5112_v4, %v5037_v1  ;;  %v4781_v28 = vld [vmem:[#allocation2] sm:$0xff]   ;;  %3939 = vst [vmem:[#allocation2 + $0x50] sm:$0xff] %v3938_v61   ;;  %v278_v30 = vmul.bf16 %v5112_v4, %v5039_v2  ;;  %v303_v31 = vmul.bf16 %v5106_v58, %v5090_v22  ;;  %v4782_v33 = vld [vmem:[#allocation2 + $0x8] sm:$0xff]  }
 0x11e   :  { %v3944_v29 = vcombine.low %v273_v63, %v274_v10  ;;  %v304_v32 = vmul.bf16 %v5106_v58, %v5092_v23  ;;  %4337 = vmatprep.mubr.bf16.mxu0 %v4780_v21  ;;  %3941 = vst [vmem:[#allocation2 + $0x58] sm:$0xff] %v3940_v24   ;;  %v3946_v34 = vcombine.low %v275_v12, %v276_v26  ;;  %v4783_v39 = vld [vmem:[#allocation2 + $0x10] sm:$0xff]  }
 0x11f   :  { %3943 = vst [vmem:[#allocation2 + $0x60] sm:$0xff] %v3942_v25   ;;  %v305_v37 = vmul.bf16 %v5106_v58, %v5082_v19  ;;  %v306_v38 = vmul.bf16 %v5106_v58, %v5084_v20  ;;  %v307_v4 = vmul.bf16 %v5106_v58, %v5074_v16  ;;  %4481 = vmatprep.mubr.bf16.mxu1 %v4781_v28 }
 0x120   :  { %3945 = vst [vmem:[#allocation2 + $0x68] sm:$0xff] %v3944_v29   ;;  %v3948_v40 = vcombine.low %v277_v27, %v278_v30  ;;  %v3950_v41 = vcombine.low %v303_v31, %v304_v32  ;;  %v308_v42 = vmul.bf16 %v5106_v58, %v5076_v17  ;;  %v309_v43 = vmul.bf16 %v5106_v58, %v5066_v13  ;;  %v4784_v27 = vld [vmem:[#allocation2 + $0x18] sm:$0xff]   ;;  %v4785_v32 = vld [vmem:[#allocation2 + $0x20] sm:$0xff]  }
 0x121   :  { %4338 = vmatmul.mubr.bf16.vlgmr.msra.gmra.mxu0 %v4782_v33  ;;  %3947 = vst [vmem:[#allocation2 + $0x70] sm:$0xff] %v3946_v34   ;;  %v3952_v44 = vcombine.low %v305_v37, %v306_v38  ;;  %v310_v45 = vmul.bf16 %v5106_v58, %v5068_v14  ;;  %v311_v46 = vmul.bf16 %v5106_v58, %v5055_v9 }
 0x122   :  { %v312_v47 = vmul.bf16 %v5106_v58, %v5059_v11  ;;  %4341 = vmatprep.mubr.bf16.mxu0 %v4783_v39  ;;  %3949 = vst [vmem:[#allocation2 + $0x78] sm:$0xff] %v3948_v40   ;;  %3951 = vst [vmem:[#allocation2 + $0x80] sm:$0xff] %v3950_v41   ;;  %v3954_v48 = vcombine.low %v307_v4, %v308_v42  ;;  %v313_v49 = vmul.bf16 %v5106_v58, %v5050_v7 }
 0x123   :  { %v314_v50 = vmul.bf16 %v5106_v58, %v5052_v8  ;;  %v315_v51 = vmul.bf16 %v5106_v58, %v5041_v3  ;;  %3953 = vst [vmem:[#allocation2 + $0x88] sm:$0xff] %v3952_v44   ;;  %v3956_v52 = vcombine.low %v309_v43, %v310_v45  ;;  %v316_v54 = vmul.bf16 %v5106_v58, %v5045_v5 }
 0x124   :  { %v3958_v53 = vcombine.low %v311_v46, %v312_v47  ;;  %v317_v55 = vmul.bf16 %v5106_v58, %v5037_v1  ;;  %3955 = vst [vmem:[#allocation2 + $0x90] sm:$0xff] %v3954_v48   ;;  %v318_v57 = vmul.bf16 %v5106_v58, %v5039_v2  ;;  %v343_v59 = vmul.bf16 %v5114_v6, %v5090_v22 }
 0x125   :  { %v3960_v56 = vcombine.low %v313_v49, %v314_v50  ;;  %v344_v61 = vmul.bf16 %v5114_v6, %v5092_v23  ;;  %3957 = vst [vmem:[#allocation2 + $0x98] sm:$0xff] %v3956_v52   ;;  %v3962_v63 = vcombine.low %v315_v51, %v316_v54  ;;  %v345_v10 = vmul.bf16 %v5114_v6, %v5082_v19 }
 0x126   :  { %3959 = vst [vmem:[#allocation2 + $0xa0] sm:$0xff] %v3958_v53   ;;  %v346_v12 = vmul.bf16 %v5114_v6, %v5084_v20  ;;  %v347_v21 = vmul.bf16 %v5114_v6, %v5074_v16  ;;  %v3964_v58 = vcombine.low %v317_v55, %v318_v57  ;;  %v348_v25 = vmul.bf16 %v5114_v6, %v5076_v17 }
 0x127   :  { %3961 = vst [vmem:[#allocation2 + $0xa8] sm:$0xff] %v3960_v56   ;;  %v3966_v24 = vcombine.low %v343_v59, %v344_v61  ;;  %v349_v26 = vmul.bf16 %v5114_v6, %v5066_v13  ;;  %3963 = vst [vmem:[#allocation2 + $0xb0] sm:$0xff] %v3962_v63   ;;  %v350_v29 = vmul.bf16 %v5114_v6, %v5068_v14 }
 0x128   :  { %v3968_v28 = vcombine.low %v345_v10, %v346_v12  ;;  %v351_v30 = vmul.bf16 %v5114_v6, %v5055_v9  ;;  %v352_v31 = vmul.bf16 %v5114_v6, %v5059_v11  ;;  %3965 = vst [vmem:[#allocation2 + $0xb8] sm:$0xff] %v3964_v58   ;;  %v3970_v33 = vcombine.low %v347_v21, %v348_v25  ;;  %v4786_v10 = vld [vmem:[#allocation2 + $0x28] sm:$0xff]   ;;  %v4787_v25 = vld [vmem:[#allocation2 + $0x30] sm:$0xff]  }
 0x129   :  { %3967 = vst [vmem:[#allocation2 + $0xc0] sm:$0xff] %v3966_v24   ;;  %v353_v34 = vmul.bf16 %v5114_v6, %v5050_v7  ;;  %v354_v37 = vmul.bf16 %v5114_v6, %v5052_v8  ;;  %v355_v38 = vmul.bf16 %v5114_v6, %v5041_v3  ;;  %4342 = vmatmul.mubr.bf16.gmra.mxu0 %v4784_v27 }
 0x12a   :  { %3969 = vst [vmem:[#allocation2 + $0xc8] sm:$0xff] %v3968_v28   ;;  %v3972_v4 = vcombine.low %v349_v26, %v350_v29  ;;  %v3974_v39 = vcombine.low %v351_v30, %v352_v31  ;;  %v356_v40 = vmul.bf16 %v5114_v6, %v5045_v5  ;;  %v357_v41 = vmul.bf16 %v5114_v6, %v5037_v1 }
 0x12b   :  { %4345 = vmatprep.mubr.bf16.mxu0 %v4785_v32  ;;  %3971 = vst [vmem:[#allocation2 + $0xd0] sm:$0xff] %v3970_v33   ;;  %v3976_v42 = vcombine.low %v353_v34, %v354_v37  ;;  %v358_v43 = vmul.bf16 %v5114_v6, %v5039_v2  ;;  %v383_v44 = vmul.bf16 %v5108_v60, %v5090_v22 }
 0x12c   :  { %v384_v45 = vmul.bf16 %v5108_v60, %v5092_v23  ;;  %3973 = vst [vmem:[#allocation2 + $0xd8] sm:$0xff] %v3972_v4   ;;  %3975 = vst [vmem:[#allocation2 + $0xe0] sm:$0xff] %v3974_v39   ;;  %v3978_v46 = vcombine.low %v355_v38, %v356_v40  ;;  %v385_v47 = vmul.bf16 %v5108_v60, %v5082_v19 }
 0x12d   :  { %v386_v48 = vmul.bf16 %v5108_v60, %v5084_v20  ;;  %v387_v49 = vmul.bf16 %v5108_v60, %v5074_v16  ;;  %3977 = vst [vmem:[#allocation2 + $0xe8] sm:$0xff] %v3976_v42   ;;  %v3980_v6 = vcombine.low %v357_v41, %v358_v43  ;;  %v388_v51 = vmul.bf16 %v5108_v60, %v5076_v17 }
 0x12e   :  { %v3982_v50 = vcombine.low %v383_v44, %v384_v45  ;;  %v389_v52 = vmul.bf16 %v5108_v60, %v5066_v13  ;;  %3979 = vst [vmem:[#allocation2 + $0xf0] sm:$0xff] %v3978_v46   ;;  %v390_v54 = vmul.bf16 %v5108_v60, %v5068_v14  ;;  %v391_v55 = vmul.bf16 %v5108_v60, %v5055_v9 }
 0x12f   :  { %v3984_v53 = vcombine.low %v385_v47, %v386_v48  ;;  %v392_v56 = vmul.bf16 %v5108_v60, %v5059_v11  ;;  %3981 = vst [vmem:[#allocation2 + $0xf8] sm:$0xff] %v3980_v6   ;;  %v3986_v57 = vcombine.low %v387_v49, %v388_v51  ;;  %v393_v59 = vmul.bf16 %v5108_v60, %v5050_v7 }
 0x130   :  { %3983 = vst [vmem:[#allocation2 + $0x100] sm:$0xff] %v3982_v50   ;;  %v394_v61 = vmul.bf16 %v5108_v60, %v5052_v8  ;;  %v395_v63 = vmul.bf16 %v5108_v60, %v5041_v3  ;;  %v3988_v12 = vcombine.low %v389_v52, %v390_v54  ;;  %v396_v58 = vmul.bf16 %v5108_v60, %v5045_v5 }
 0x131   :  { %3985 = vst [vmem:[#allocation2 + $0x108] sm:$0xff] %v3984_v53   ;;  %v3990_v21 = vcombine.low %v391_v55, %v392_v56  ;;  %v397_v24 = vmul.bf16 %v5108_v60, %v5037_v1  ;;  %3987 = vst [vmem:[#allocation2 + $0x110] sm:$0xff] %v3986_v57   ;;  %v398_v27 = vmul.bf16 %v5108_v60, %v5039_v2  ;;  %4346 = vmatmul.mubr.bf16.gmra.mxu0 %v4786_v10  ;;  %v4788_v53 = vld [vmem:[#allocation2 + $0x38] sm:$0xff]  }
 0x132   :  { %v3992_v26 = vcombine.low %v393_v59, %v394_v61  ;;  %v423_v28 = vmul.bf16 %v5118_v15, %v5090_v22  ;;  %v424_v29 = vmul.bf16 %v5118_v15, %v5092_v23  ;;  %3989 = vst [vmem:[#allocation2 + $0x118] sm:$0xff] %v3988_v12   ;;  %v3994_v30 = vcombine.low %v395_v63, %v396_v58 }
 0x133   :  { %3991 = vst [vmem:[#allocation2 + $0x120] sm:$0xff] %v3990_v21   ;;  %v425_v31 = vmul.bf16 %v5118_v15, %v5082_v19  ;;  %v426_v32 = vmul.bf16 %v5118_v15, %v5084_v20  ;;  %v427_v33 = vmul.bf16 %v5118_v15, %v5074_v16  ;;  %4349 = vmatprep.mubr.bf16.mxu0 %v4787_v25 }
 0x134   :  { %3993 = vst [vmem:[#allocation2 + $0x128] sm:$0xff] %v3992_v26   ;;  %v3996_v60 = vcombine.low %v397_v24, %v398_v27  ;;  %v3998_v34 = vcombine.low %v423_v28, %v424_v29  ;;  %v428_v37 = vmul.bf16 %v5118_v15, %v5076_v17  ;;  %v429_v38 = vmul.bf16 %v5118_v15, %v5066_v13 }
 0x135   :  { %3995 = vst [vmem:[#allocation2 + $0x130] sm:$0xff] %v3994_v30   ;;  %v4000_v4 = vcombine.low %v425_v31, %v426_v32  ;;  %v430_v39 = vmul.bf16 %v5118_v15, %v5068_v14  ;;  %v431_v40 = vmul.bf16 %v5118_v15, %v5055_v9  ;;  %v432_v41 = vmul.bf16 %v5118_v15, %v5059_v11 }
 0x136   :  { %3997 = vst [vmem:[#allocation2 + $0x138] sm:$0xff] %v3996_v60   ;;  %3999 = vst [vmem:[#allocation2 + $0x140] sm:$0xff] %v3998_v34   ;;  %v4002_v42 = vcombine.low %v427_v33, %v428_v37  ;;  %v433_v43 = vmul.bf16 %v5118_v15, %v5050_v7  ;;  %v434_v44 = vmul.bf16 %v5118_v15, %v5052_v8 }
 0x137   :  { %v435_v45 = vmul.bf16 %v5118_v15, %v5041_v3  ;;  %4001 = vst [vmem:[#allocation2 + $0x148] sm:$0xff] %v4000_v4   ;;  %v4004_v46 = vcombine.low %v429_v38, %v430_v39  ;;  %v4006_v47 = vcombine.low %v431_v40, %v432_v41  ;;  %v436_v48 = vmul.bf16 %v5118_v15, %v5045_v5 }
 0x138   :  { %v437_v49 = vmul.bf16 %v5118_v15, %v5037_v1  ;;  %4003 = vst [vmem:[#allocation2 + $0x150] sm:$0xff] %v4002_v42   ;;  %v4008_v6 = vcombine.low %v433_v43, %v434_v44  ;;  %v438_v50 = vmul.bf16 %v5118_v15, %v5039_v2  ;;  %v463_v51 = vmul.bf16 %v5110_v62, %v5090_v22  ;;  %v4789_v15 = vld [vmem:[#allocation2 + $0x40] sm:$0xff]   ;;  %v4790_v42 = vld [vmem:[#allocation2 + $0x48] sm:$0xff]   ;;  %v4791_v44 = vld [vmem:[#allocation2 + $0x50] sm:$0xff]  }
 0x139   :  { %v464_v52 = vmul.bf16 %v5110_v62, %v5092_v23  ;;  %4005 = vst [vmem:[#allocation2 + $0x158] sm:$0xff] %v4004_v46   ;;  %4007 = vst [vmem:[#allocation2 + $0x160] sm:$0xff] %v4006_v47   ;;  %v4010_v54 = vcombine.low %v435_v45, %v436_v48  ;;  %v465_v55 = vmul.bf16 %v5110_v62, %v5082_v19  ;;  %4350 = vmatmul.mubr.bf16.gmra.mxu0 %v4788_v53  ;;  %v4801_v53 = vld [vmem:[#allocation2 + $0xa0] sm:$0xff]  }
 0x13a   :  { %v466_v56 = vmul.bf16 %v5110_v62, %v5084_v20  ;;  %v467_v57 = vmul.bf16 %v5110_v62, %v5074_v16  ;;  %4009 = vst [vmem:[#allocation2 + $0x168] sm:$0xff] %v4008_v6   ;;  %v4012_v59 = vcombine.low %v437_v49, %v438_v50  ;;  %v468_v63 = vmul.bf16 %v5110_v62, %v5076_v17  ;;  %v4792_v49 = vld [vmem:[#allocation2 + $0x58] sm:$0xff]   ;;  %v4793_v6 = vld [vmem:[#allocation2 + $0x60] sm:$0xff]   ;;  %v4795_v50 = vld [vmem:[#allocation2 + $0x70] sm:$0xff]  }
 0x13b   :  { %v4014_v61 = vcombine.low %v463_v51, %v464_v52  ;;  %v469_v10 = vmul.bf16 %v5110_v62, %v5066_v13  ;;  %4011 = vst [vmem:[#allocation2 + $0x170] sm:$0xff] %v4010_v54   ;;  %v470_v21 = vmul.bf16 %v5110_v62, %v5068_v14  ;;  %v471_v58 = vmul.bf16 %v5110_v62, %v5055_v9  ;;  %v4797_v51 = vld [vmem:[#allocation2 + $0x80] sm:$0xff]   ;;  %v4800_v52 = vld [vmem:[#allocation2 + $0x98] sm:$0xff]   ;;  %v4802_v54 = vld [vmem:[#allocation2 + $0xa8] sm:$0xff]  }
 0x13c   :  { %v4016_v12 = vcombine.low %v465_v55, %v466_v56  ;;  %v472_v24 = vmul.bf16 %v5110_v62, %v5059_v11  ;;  %4353 = vmatprep.mubr.bf16.mxu0 %v4789_v15  ;;  %4013 = vst [vmem:[#allocation2 + $0x178] sm:$0xff] %v4012_v59   ;;  %v4018_v25 = vcombine.low %v467_v57, %v468_v63  ;;  %v4803_v55 = vld [vmem:[#allocation2 + $0xb0] sm:$0xff]   ;;  %v4804_v56 = vld [vmem:[#allocation2 + $0xb8] sm:$0xff]   ;;  %v4805_v57 = vld [vmem:[#allocation2 + $0xc0] sm:$0xff]  }
 0x13d   :  { %4015 = vst [vmem:[#allocation2 + $0x180] sm:$0xff] %v4014_v61   ;;  %v473_v26 = vmul.bf16 %v5110_v62, %v5050_v7  ;;  %v474_v27 = vmul.bf16 %v5110_v62, %v5052_v8  ;;  %v475_v28 = vmul.bf16 %v5110_v62, %v5041_v3  ;;  %v4020_v29 = vcombine.low %v469_v10, %v470_v21  ;;  %v4806_v15 = vld [vmem:[#allocation2 + $0xc8] sm:$0xff]   ;;  %v4807_v59 = vld [vmem:[#allocation2 + $0xd0] sm:$0xff]   ;;  %v4808_v61 = vld [vmem:[#allocation2 + $0xd8] sm:$0xff]  }
 0x13e   :  { %4017 = vst [vmem:[#allocation2 + $0x188] sm:$0xff] %v4016_v12   ;;  %v4022_v30 = vcombine.low %v471_v58, %v472_v24  ;;  %v476_v31 = vmul.bf16 %v5110_v62, %v5045_v5  ;;  %v477_v32 = vmul.bf16 %v5110_v62, %v5037_v1  ;;  %4019 = vst [vmem:[#allocation2 + $0x190] sm:$0xff] %v4018_v25   ;;  %v4809_v63 = vld [vmem:[#allocation2 + $0xe0] sm:$0xff]   ;;  %v4810_v10 = vld [vmem:[#allocation2 + $0xe8] sm:$0xff]  }
 0x13f   :  { %v4024_v33 = vcombine.low %v473_v26, %v474_v27  ;;  %v478_v60 = vmul.bf16 %v5110_v62, %v5039_v2  ;;  %v503_v34 = vmul.bf16 %v5120_v18, %v5090_v22  ;;  %v504_v37 = vmul.bf16 %v5120_v18, %v5092_v23  ;;  %4021 = vst [vmem:[#allocation2 + $0x198] sm:$0xff] %v4020_v29   ;;  %v4811_v12 = vld [vmem:[#allocation2 + $0xf0] sm:$0xff]   ;;  %v4812_v21 = vld [vmem:[#allocation2 + $0xf8] sm:$0xff]   ;;  %v4813_v58 = vld [vmem:[#allocation2 + $0x100] sm:$0xff]  }
 0x140   :  { %4023 = vst [vmem:[#allocation2 + $0x1a0] sm:$0xff] %v4022_v30   ;;  %v4026_v38 = vcombine.low %v475_v28, %v476_v31  ;;  %v505_v4 = vmul.bf16 %v5120_v18, %v5082_v19  ;;  %v506_v39 = vmul.bf16 %v5120_v18, %v5084_v20  ;;  %v507_v40 = vmul.bf16 %v5120_v18, %v5074_v16  ;;  %v4814_v24 = vld [vmem:[#allocation2 + $0x108] sm:$0xff]   ;;  %v4815_v25 = vld [vmem:[#allocation2 + $0x110] sm:$0xff]   ;;  %v4816_v26 = vld [vmem:[#allocation2 + $0x118] sm:$0xff]  }
 0x141   :  { %4025 = vst [vmem:[#allocation2 + $0x1a8] sm:$0xff] %v4024_v33   ;;  %v4028_v62 = vcombine.low %v477_v32, %v478_v60  ;;  %v4030_v41 = vcombine.low %v503_v34, %v504_v37  ;;  %v508_v22 = vmul.bf16 %v5120_v18, %v5076_v17  ;;  %v509_v23 = vmul.bf16 %v5120_v18, %v5066_v13  ;;  %v4817_v27 = vld [vmem:[#allocation2 + $0x120] sm:$0xff]   ;;  %v4818_v28 = vld [vmem:[#allocation2 + $0x128] sm:$0xff]   ;;  %v4819_v29 = vld [vmem:[#allocation2 + $0x130] sm:$0xff]  }
 0x142   :  { %4027 = vst [vmem:[#allocation2 + $0x1b0] sm:$0xff] %v4026_v38   ;;  %v4032_v43 = vcombine.low %v505_v4, %v506_v39  ;;  %v510_v19 = vmul.bf16 %v5120_v18, %v5068_v14  ;;  %v511_v20 = vmul.bf16 %v5120_v18, %v5055_v9  ;;  %v512_v16 = vmul.bf16 %v5120_v18, %v5059_v11  ;;  %v4820_v30 = vld [vmem:[#allocation2 + $0x138] sm:$0xff]   ;;  %v4821_v31 = vld [vmem:[#allocation2 + $0x140] sm:$0xff]   ;;  %v4822_v32 = vld [vmem:[#allocation2 + $0x148] sm:$0xff]  }
 0x143   :  { %4029 = vst [vmem:[#allocation2 + $0x1b8] sm:$0xff] %v4028_v62   ;;  %4031 = vst [vmem:[#allocation2 + $0x1c0] sm:$0xff] %v4030_v41   ;;  %v4034_v45 = vcombine.low %v507_v40, %v508_v22  ;;  %v513_v17 = vmul.bf16 %v5120_v18, %v5050_v7  ;;  %v514_v13 = vmul.bf16 %v5120_v18, %v5052_v8  ;;  %4354 = vmatmul.mubr.bf16.gmra.mxu0 %v4790_v42  ;;  %v4823_v33 = vld [vmem:[#allocation2 + $0x150] sm:$0xff]   ;;  %v4824_v60 = vld [vmem:[#allocation2 + $0x158] sm:$0xff]  }
 0x144   :  { %v515_v46 = vmul.bf16 %v5120_v18, %v5041_v3  ;;  %4033 = vst [vmem:[#allocation2 + $0x1c8] sm:$0xff] %v4032_v43   ;;  %v4036_v14 = vcombine.low %v509_v23, %v510_v19  ;;  %v4038_v9 = vcombine.low %v511_v20, %v512_v16  ;;  %v516_v11 = vmul.bf16 %v5120_v18, %v5045_v5  ;;  %v4794_v5 = vld [vmem:[#allocation2 + $0x68] sm:$0xff]   ;;  %v4825_v34 = vld [vmem:[#allocation2 + $0x160] sm:$0xff]   ;;  %v4827_v39 = vld [vmem:[#allocation2 + $0x170] sm:$0xff]  }
 0x145   :  { %v517_v47 = vmul.bf16 %v5120_v18, %v5037_v1  ;;  %4357 = vmatprep.mubr.bf16.mxu0 %v4791_v44  ;;  %4035 = vst [vmem:[#allocation2 + $0x1d0] sm:$0xff] %v4034_v45   ;;  %v4040_v48 = vcombine.low %v513_v17, %v514_v13  ;;  %v518_v7 = vmul.bf16 %v5120_v18, %v5039_v2  ;;  %v4796_v1 = vld [vmem:[#allocation2 + $0x78] sm:$0xff]   ;;  %v4798_v2 = vld [vmem:[#allocation2 + $0x88] sm:$0xff]   ;;  %v4799_v18 = vld [vmem:[#allocation2 + $0x90] sm:$0xff]  }
 0x146   :  { %4037 = vst [vmem:[#allocation2 + $0x1d8] sm:$0xff] %v4036_v14   ;;  %4039 = vst [vmem:[#allocation2 + $0x1e0] sm:$0xff] %v4038_v9   ;;  %v4042_v8 = vcombine.low %v515_v46, %v516_v11  ;;  %v4826_v38 = vld [vmem:[#allocation2 + $0x168] sm:$0xff]   ;;  %v4828_v41 = vld [vmem:[#allocation2 + $0x178] sm:$0xff]  }
 0x147   :  { %4041 = vst [vmem:[#allocation2 + $0x1e8] sm:$0xff] %v4040_v48   ;;  %v4044_v3 = vcombine.low %v517_v47, %v518_v7  ;;  %v4829_v22 = vld [vmem:[#allocation2 + $0x180] sm:$0xff]   ;;  %v4830_v23 = vld [vmem:[#allocation2 + $0x188] sm:$0xff]   ;;  %v4831_v42 = vld [vmem:[#allocation2 + $0x190] sm:$0xff]  }
 0x148   :  { %4043 = vst [vmem:[#allocation2 + $0x1f0] sm:$0xff] %v4042_v8   ;;  %v4832_v45 = vld [vmem:[#allocation2 + $0x198] sm:$0xff]   ;;  %v4833_v13 = vld [vmem:[#allocation2 + $0x1a0] sm:$0xff]   ;;  %v4834_v47 = vld [vmem:[#allocation2 + $0x1a8] sm:$0xff]  }
 0x149   :  { %4045 = vst [vmem:[#allocation2 + $0x1f8] sm:$0xff] %v4044_v3   ;;  %v4835_v48 = vld [vmem:[#allocation2 + $0x1b0] sm:$0xff]  }
 0x14b   :  { %4358 = vmatmul.mubr.bf16.gmra.mxu0 %v4792_v49 }
 0x14c   :  { %4361 = vmatprep.mubr.bf16.mxu0 %v4793_v6  ;;  %v4836_v6 = vld [vmem:[#allocation2 + $0x1b8] sm:$0xff]  }
 0x153   :  { %4362 = vmatmul.mubr.bf16.gmra.mxu0 %v4794_v5  ;;  %v4837_v5 = vld [vmem:[#allocation2 + $0x1c0] sm:$0xff]  }
 0x154   :  { %4365 = vmatprep.mubr.bf16.mxu0 %v4795_v50 }
 0x15b   :  { %4366 = vmatmul.mubr.bf16.gmra.mxu0 %v4796_v1 }
 0x15c   :  { %4369 = vmatprep.mubr.bf16.mxu0 %v4797_v51 }
 0x163   :  { %4370 = vmatmul.mubr.bf16.gmra.mxu0 %v4798_v2 }
 0x164   :  { %4373 = vmatprep.mubr.bf16.mxu0 %v4799_v18 }
 0x16b   :  { %4374 = vmatmul.mubr.bf16.gmra.mxu0 %v4800_v52  ;;  %v4838_v52 = vld [vmem:[#allocation2 + $0x1c8] sm:$0xff]  }
 0x16c   :  { %4377 = vmatprep.mubr.bf16.mxu0 %v4801_v53 }
 0x173   :  { %4378 = vmatmul.mubr.bf16.gmra.mxu0 %v4802_v54  ;;  %v4839_v54 = vld [vmem:[#allocation2 + $0x1d0] sm:$0xff]  }
 0x174   :  { %4381 = vmatprep.mubr.bf16.mxu0 %v4803_v55 }
 0x17b   :  { %4382 = vmatmul.mubr.bf16.gmra.mxu0 %v4804_v56 }
 0x17c   :  { %4385 = vmatprep.mubr.bf16.mxu0 %v4805_v57 }
 0x183   :  { %4386 = vmatmul.mubr.bf16.gmra.mxu0 %v4806_v15 }
 0x184   :  { %4389 = vmatprep.mubr.bf16.mxu0 %v4807_v59 }
 0x18b   :  { %4390 = vmatmul.mubr.bf16.gmra.mxu0 %v4808_v61  ;;  %v4840_v61 = vld [vmem:[#allocation2 + $0x1d8] sm:$0xff]  }
 0x18c   :  { %4393 = vmatprep.mubr.bf16.mxu0 %v4809_v63 }
 0x193   :  { %4394 = vmatmul.mubr.bf16.gmra.mxu0 %v4810_v10  ;;  %v4841_v10 = vld [vmem:[#allocation2 + $0x1e0] sm:$0xff]  }
 0x194   :  { %4397 = vmatprep.mubr.bf16.mxu0 %v4811_v12 }
 0x19b   :  { %4398 = vmatmul.mubr.bf16.gmra.mxu0 %v4812_v21 }
 0x19c   :  { %4401 = vmatprep.mubr.bf16.mxu0 %v4813_v58 }
 0x1a3   :  { %4402 = vmatmul.mubr.bf16.gmra.mxu0 %v4814_v24 }
 0x1a4   :  { %4405 = vmatprep.mubr.bf16.mxu0 %v4815_v25 }
 0x1ab   :  { %4406 = vmatmul.mubr.bf16.gmra.mxu0 %v4816_v26  ;;  %v4842_v26 = vld [vmem:[#allocation2 + $0x1e8] sm:$0xff]  }
 0x1ac   :  { %4409 = vmatprep.mubr.bf16.mxu0 %v4817_v27 }
 0x1b3   :  { %4410 = vmatmul.mubr.bf16.gmra.mxu0 %v4818_v28  ;;  %v4843_v28 = vld [vmem:[#allocation2 + $0x1f0] sm:$0xff]  }
 0x1b4   :  { %4413 = vmatprep.mubr.bf16.mxu0 %v4819_v29 }
 0x1bb   :  { %4414 = vmatmul.mubr.bf16.gmra.mxu0 %v4820_v30 }
 0x1bc   :  { %4417 = vmatprep.mubr.bf16.mxu0 %v4821_v31 }
 0x1c3   :  { %4418 = vmatmul.mubr.bf16.gmra.mxu0 %v4822_v32 }
 0x1c4   :  { %4421 = vmatprep.mubr.bf16.mxu0 %v4823_v33  ;;  %v4844_v33 = vld [vmem:[#allocation2 + $0x1f8] sm:$0xff]  }
 0x1cb   :  { %4422 = vmatmul.mubr.bf16.gmra.mxu0 %v4824_v60 }
 0x1cc   :  { %4425 = vmatprep.mubr.bf16.mxu0 %v4825_v34  ;;  %v4845_v34 = vld [vmem:[#allocation2 + $0x100] sm:$0xff]  }
 0x1cd   :  { %v5360_v37 = vpop.f32.mrf.mxu1 }
 0x1cf   :  { %v4319_v4 = vpop.f32.mrf.mxu1 }
 0x1d1   :  { %v205_v40 = vpop.f32.mrf.mxu1 }
 0x1d3   :  { %4426 = vmatmul.mubr.bf16.gmra.mxu0 %v4826_v38  ;;  %v4320_v62 = vpop.f32.mrf.mxu1 }
 0x1d4   :  { %4429 = vmatprep.mubr.bf16.mxu0 %v4827_v39 }
 0x1db   :  { %4430 = vmatmul.mubr.bf16.gmra.mxu0 %v4828_v41 }
 0x1dc   :  { %4433 = vmatprep.mubr.bf16.mxu0 %v4829_v22 }
 0x1e1   :  { %v4339_v43 = vpop.f32.mrf.mxu0 }
 0x1e3   :  { %4434 = vmatmul.mubr.bf16.gmra.mxu0 %v4830_v23  ;;  %v1145_v19 = vpop.f32.mrf.mxu0 }
 0x1e4   :  { %4437 = vmatprep.mubr.bf16.mxu0 %v4831_v42 }
 0x1e5   :  { %v4340_v20 = vpop.f32.mrf.mxu0 }
 0x1e6   :  { %v5362_v16 = vpack.c.bf16 %v4340_v20, %v4339_v43 }
 0x1e7   :  { %v1148_v44 = vpop.f32.mrf.mxu0 }
 0x1e8   :  { %v5364_v17 = vpack.c.bf16 %v1148_v44, %v1145_v19 }
 0x1e9   :  { %v4343_v46 = vpop.f32.mrf.mxu0 }
 0x1eb   :  { %4438 = vmatmul.mubr.bf16.gmra.mxu0 %v4832_v45  ;;  %v5366_v14 = vpop.f32.mrf.mxu0 }
 0x1ec   :  { %4441 = vmatprep.mubr.bf16.mxu0 %v4833_v13 }
 0x1ed   :  { %v4344_v9 = vpop.f32.mrf.mxu0 }
 0x1ee   :  { %v1742_v60 = vpack.c.bf16 %v4344_v9, %v4343_v46 }
 0x1ef   :  { %v5368_v11 = vpop.f32.mrf.mxu0 }
 0x1f0   :  { %v1741_v62 = vpack.c.bf16 %v5368_v11, %v5366_v14 }
 0x1f1   :  { %v4347_v7 = vpop.f32.mrf.mxu0 }
 0x1f3   :  { %4442 = vmatmul.mubr.bf16.gmra.mxu0 %v4834_v47  ;;  %v1177_v8 = vpop.f32.mrf.mxu0 }
 0x1f4   :  { %4445 = vmatprep.mubr.bf16.mxu0 %v4835_v48 }
 0x1f5   :  { %v4348_v3 = vpop.f32.mrf.mxu0 }
 0x1f6   :  { %v1744_v63 = vpack.c.bf16 %v4348_v3, %v4347_v7 }
 0x1f7   :  { %v1180_v49 = vpop.f32.mrf.mxu0 }
 0x1f8   :  { %v1743_v27 = vpack.c.bf16 %v1180_v49, %v1177_v8 }
 0x1f9   :  { %v4351_v50 = vpop.f32.mrf.mxu0 }
 0x1fb   :  { %4446 = vmatmul.mubr.bf16.gmra.mxu0 %v4836_v6  ;;  %v1193_v1 = vpop.f32.mrf.mxu0  ;;  %v4847_v6 = vld [vmem:[#allocation2 + $0x10] sm:$0xff]  }
 0x1fc   :  { %4449 = vmatprep.mubr.bf16.mxu0 %v4837_v5 }
 0x1fd   :  { %v4352_v51 = vpop.f32.mrf.mxu0 }
 0x1fe   :  { %v1746_v2 = vpack.c.bf16 %v4352_v51, %v4351_v50 }
 0x1ff   :  { %v1196_v18 = vpop.f32.mrf.mxu0 }
 0x200   :  { %v1745_v53 = vpack.c.bf16 %v1196_v18, %v1193_v1  ;;  %4465 = vmatprep.subr.bf16.mxu1 %v1746_v2 }
 0x201   :  { %4466 = vmatpush3.bf16.xpose.msra.mxu1 %v1746_v2 }
 0x202   :  { %4467 = vmatprep.subr.bf16.mxu1 %v1745_v53 }
 0x203   :  { %v4355_v55 = vpop.f32.mrf.mxu0  ;;  %4450 = vmatmul.mubr.bf16.gmra.mxu0 %v4838_v52  ;;  %v4849_v52 = vld [vmem:[#allocation2 + $0x20] sm:$0xff]  }
 0x204   :  { %4453 = vmatprep.mubr.bf16.mxu0 %v4839_v54 }
 0x205   :  { %v5370_v56 = vpop.f32.mrf.mxu0 }
 0x207   :  { %v4356_v57 = vpop.f32.mrf.mxu0 }
 0x208   :  { %v5372_v15 = vpack.c.bf16 %v4356_v57, %v4355_v55 }
 0x209   :  { %v5374_v59 = vpop.f32.mrf.mxu0  ;;  %4468 = vmatpush3.bf16.xpose.msra.mxu1 %v1745_v53 }
 0x20a   :  { %4469 = vmatprep.subr.bf16.mxu1 %v1744_v63 }
 0x20b   :  { %v4359_v12 = vpop.f32.mrf.mxu0  ;;  %4454 = vmatmul.mubr.bf16.gmra.mxu0 %v4840_v61 }
 0x20c   :  { %4457 = vmatprep.mubr.bf16.mxu0 %v4841_v10 }
 0x20d   :  { %v5376_v21 = vpop.f32.mrf.mxu0 }
 0x20f   :  { %v4360_v58 = vpop.f32.mrf.mxu0 }
 0x210   :  { %v5378_v24 = vpack.c.bf16 %v4360_v58, %v4359_v12  ;;  %v4851_v12 = vld [vmem:[#allocation2 + $0x30] sm:$0xff]  }
 0x211   :  { %v5380_v25 = vpop.f32.mrf.mxu0  ;;  %4470 = vmatpush3.bf16.xpose.msra.mxu1 %v1744_v63  ;;  %v4850_v63 = vld [vmem:[#allocation2 + $0x28] sm:$0xff]  }
 0x212   :  { %4471 = vmatprep.subr.bf16.mxu1 %v1743_v27 }
 0x213   :  { %v4363_v29 = vpop.f32.mrf.mxu0  ;;  %4458 = vmatmul.mubr.bf16.gmra.mxu0 %v4842_v26 }
 0x214   :  { %4461 = vmatprep.mubr.bf16.mxu0 %v4843_v28 }
 0x215   :  { %v5382_v30 = vpop.f32.mrf.mxu0 }
 0x217   :  { %v4364_v31 = vpop.f32.mrf.mxu0 }
 0x218   :  { %v1950_v53 = vpack.c.bf16 %v4364_v31, %v4363_v29 }
 0x219   :  { %v5384_v32 = vpop.f32.mrf.mxu0  ;;  %4472 = vmatpush3.bf16.xpose.msra.mxu1 %v1743_v27 }
 0x21a   :  { %4473 = vmatprep.subr.bf16.mxu1 %v1742_v60  ;;  %v1949_v58 = vpack.c.bf16 %v5384_v32, %v5382_v30 }
 0x21b   :  { %v4367_v38 = vpop.f32.mrf.mxu0  ;;  %4462 = vmatmul.mubr.bf16.gmra.mxu0 %v4844_v33  ;;  %v4852_v33 = vld [vmem:[#allocation2 + $0x38] sm:$0xff]  }
 0x21c   :  { %4609 = vmatprep.mubr.bf16.mxu0 %v4845_v34  ;;  %v4853_v34 = vld [vmem:[#allocation2 + $0x40] sm:$0xff]  }
 0x21d   :  { %v1257_v4 = vpop.f32.mrf.mxu0 }
 0x21f   :  { %v4368_v39 = vpop.f32.mrf.mxu0 }
 0x220   :  { %v1952_v48 = vpack.c.bf16 %v4368_v39, %v4367_v38 }
 0x221   :  { %v1260_v40 = vpop.f32.mrf.mxu0  ;;  %4474 = vmatpush3.bf16.xpose.msra.mxu1 %v1742_v60 }
 0x222   :  { %4475 = vmatprep.subr.bf16.mxu1 %v1741_v62  ;;  %v1951_v5 = vpack.c.bf16 %v1260_v40, %v1257_v4 }
 0x223   :  { %v4371_v41 = vpop.f32.mrf.mxu0 }
 0x225   :  { %v5388_v22 = vpop.f32.mrf.mxu0 }
 0x227   :  { %v4372_v23 = vpop.f32.mrf.mxu0 }
 0x228   :  { %v5390_v42 = vpack.c.bf16 %v4372_v23, %v4371_v41 }
 0x229   :  { %v5392_v43 = vpop.f32.mrf.mxu0  ;;  %4476 = vmatpush3.bf16.xpose.msra.mxu1 %v1741_v62  ;;  %v1947_v62 = vpack.c.bf16 %v5380_v25, %v5376_v21 }
 0x22a   :  { %4477 = vmatprep.subr.bf16.mxu1 %v5362_v16 }
 0x22b   :  { %v4375_v19 = vpop.f32.mrf.mxu0 }
 0x22d   :  { %v5395_v20 = vpop.f32.mrf.mxu0 }
 0x22f   :  { %v4376_v44 = vpop.f32.mrf.mxu0 }
 0x230   :  { %v5397_v45 = vpack.c.bf16 %v4376_v44, %v4375_v19 }
 0x231   :  { %v5399_v13 = vpop.f32.mrf.mxu0  ;;  %4478 = vmatpush3.bf16.xpose.msra.mxu1 %v5362_v16  ;;  %v4846_v16 = vld [vmem:[#allocation2 + $0x8] sm:$0xff]  }
 0x232   :  { %4479 = vmatprep.subr.bf16.mxu1 %v5364_v17 }
 0x233   :  { %v4379_v46 = vpop.f32.mrf.mxu0 }
 0x235   :  { %v5403_v14 = vpop.f32.mrf.mxu0 }
 0x237   :  { %v4380_v9 = vpop.f32.mrf.mxu0 }
 0x238   :  { %v5405_v11 = vpack.c.bf16 %v4380_v9, %v4379_v46 }
 0x239   :  { %v5407_v47 = vpop.f32.mrf.mxu0  ;;  %4480 = vmatpush3.bf16.xpose.msra.mxu1 %v5364_v17  ;;  %v4848_v17 = vld [vmem:[#allocation2 + $0x18] sm:$0xff]  }
 0x23a   :  { %4497 = vmatprep.subr.bf16.mxu1 %v1952_v48 }
 0x23b   :  { %v5409_v7 = vpop.f32.mrf.mxu0 }
 0x23d   :  { %v5412_v8 = vpop.f32.mrf.mxu0 }
 0x23f   :  { %v5414_v3 = vpop.f32.mrf.mxu0 }
 0x240   :  { %4482 = vmatmul.mubr.bf16.vlgmr.msra.gmra.mxu1 %v4846_v16 }
 0x241   :  { %v5416_v49 = vpop.f32.mrf.mxu0  ;;  %4485 = vmatprep.mubr.bf16.mxu1 %v4847_v6  ;;  %4498 = vmatpush3.bf16.xpose.msra.mxu1 %v1952_v48 }
 0x242   :  { %4499 = vmatprep.subr.bf16.mxu1 %v1951_v5 }
 0x243   :  { %v4387_v50 = vpop.f32.mrf.mxu0 }
 0x245   :  { %v5418_v1 = vpop.f32.mrf.mxu0 }
 0x247   :  { %v4388_v51 = vpop.f32.mrf.mxu0 }
 0x248   :  { %v5420_v2 = vpack.c.bf16 %v4388_v51, %v4387_v50  ;;  %4486 = vmatmul.mubr.bf16.gmra.mxu1 %v4848_v17 }
 0x249   :  { %v5422_v18 = vpop.f32.mrf.mxu0  ;;  %4489 = vmatprep.mubr.bf16.mxu1 %v4849_v52  ;;  %4500 = vmatpush3.bf16.xpose.msra.mxu1 %v1951_v5  ;;  %v2158_v52 = vpack.c.bf16 %v5414_v3, %v5409_v7 }
 0x24a   :  { %4501 = vmatprep.subr.bf16.mxu1 %v1950_v53 }
 0x24b   :  { %v4391_v54 = vpop.f32.mrf.mxu0 }
 0x24d   :  { %v1353_v55 = vpop.f32.mrf.mxu0 }
 0x24f   :  { %v4392_v57 = vpop.f32.mrf.mxu0 }
 0x250   :  { %v5424_v61 = vpack.c.bf16 %v4392_v57, %v4391_v54  ;;  %4490 = vmatmul.mubr.bf16.gmra.mxu1 %v4850_v63  ;;  %v4854_v63 = vld [vmem:[#allocation2 + $0x48] sm:$0xff]  }
 0x251   :  { %v1356_v10 = vpop.f32.mrf.mxu0  ;;  %4493 = vmatprep.mubr.bf16.mxu1 %v4851_v12  ;;  %4502 = vmatpush3.bf16.xpose.msra.mxu1 %v1950_v53  ;;  %v4855_v12 = vld [vmem:[#allocation2 + $0x50] sm:$0xff]  }
 0x252   :  { %v5428_v26 = vpack.c.bf16 %v1356_v10, %v1353_v55  ;;  %4503 = vmatprep.subr.bf16.mxu1 %v1949_v58 }
 0x253   :  { %v4395_v27 = vpop.f32.mrf.mxu0 }
 0x255   :  { %v1369_v28 = vpop.f32.mrf.mxu0 }
 0x257   :  { %v4396_v29 = vpop.f32.mrf.mxu0 }
 0x258   :  { %v5430_v31 = vpack.c.bf16 %v4396_v29, %v4395_v27  ;;  %4494 = vmatmul.mubr.bf16.gmra.mxu1 %v4852_v33  ;;  %v4856_v27 = vld [vmem:[#allocation2 + $0x58] sm:$0xff]   ;;  %v4857_v29 = vld [vmem:[#allocation2 + $0x60] sm:$0xff]  }
 0x259   :  { %v1372_v60 = vpop.f32.mrf.mxu0  ;;  %4504 = vmatpush3.bf16.xpose.msra.mxu1 %v1949_v58  ;;  %4513 = vmatprep.mubr.bf16.mxu1 %v4853_v34 }
 0x25a   :  { %v5432_v38 = vpack.c.bf16 %v1372_v60, %v1369_v28  ;;  %4505 = vmatprep.subr.bf16.mxu1 %v5378_v24 }
 0x25b   :  { %v4399_v4 = vpop.f32.mrf.mxu0 }
 0x25d   :  { %v1385_v30 = vpop.f32.mrf.mxu0 }
 0x25f   :  { %v4400_v32 = vpop.f32.mrf.mxu0 }
 0x260   :  { %v5435_v39 = vpack.c.bf16 %v4400_v32, %v4399_v4 }
 0x261   :  { %v1388_v40 = vpop.f32.mrf.mxu0  ;;  %4506 = vmatpush3.bf16.xpose.msra.mxu1 %v5378_v24  ;;  %v1945_v24 = vpack.c.bf16 %v5374_v59, %v5370_v56  ;;  %v2157_v56 = vpack.c.bf16 %v5416_v49, %v5412_v8 }
 0x262   :  { %v5439_v41 = vpack.c.bf16 %v1388_v40, %v1385_v30  ;;  %4507 = vmatprep.subr.bf16.mxu1 %v1947_v62  ;;  %v4858_v30 = vld [vmem:[#allocation2 + $0x68] sm:$0xff]   ;;  %v4859_v40 = vld [vmem:[#allocation2 + $0x70] sm:$0xff]  }
 0x263   :  { %v4403_v23 = vpop.f32.mrf.mxu0 }
 0x265   :  { %v1401_v19 = vpop.f32.mrf.mxu0 }
 0x267   :  { %v4404_v44 = vpop.f32.mrf.mxu0 }
 0x268   :  { %v5442_v46 = vpack.c.bf16 %v4404_v44, %v4403_v23 }
 0x269   :  { %v1404_v9 = vpop.f32.mrf.mxu0  ;;  %4508 = vmatpush3.bf16.xpose.msra.mxu1 %v1947_v62  ;;  %v2155_v62 = vpack.c.bf16 %v5407_v47, %v5403_v14 }
 0x26a   :  { %v5444_v48 = vpack.c.bf16 %v1404_v9, %v1401_v19  ;;  %4509 = vmatprep.subr.bf16.mxu1 %v5372_v15 }
 0x26b   :  { %v5446_v16 = vpop.f32.mrf.mxu0 }
 0x26d   :  { %v5449_v6 = vpop.f32.mrf.mxu0 }
 0x26f   :  { %v5451_v21 = vpop.f32.mrf.mxu0 }
 0x270   :  { %v2566_v14 = vpack.c.bf16 %v5451_v21, %v5446_v16 }
 0x271   :  { %v5453_v25 = vpop.f32.mrf.mxu0  ;;  %4510 = vmatpush3.bf16.xpose.msra.mxu1 %v5372_v15 }
 0x272   :  { %4511 = vmatprep.subr.bf16.mxu1 %v1945_v24  ;;  %v2565_v16 = vpack.c.bf16 %v5453_v25, %v5449_v6  ;;  %v2151_v6 = vpack.c.bf16 %v5392_v43, %v5388_v22  ;;  %v4862_v43 = vld [vmem:[#allocation2 + $0x88] sm:$0xff]  }
 0x273   :  { %v4411_v5 = vpop.f32.mrf.mxu0 }
 0x275   :  { %v1433_v50 = vpop.f32.mrf.mxu0 }
 0x277   :  { %v4412_v51 = vpop.f32.mrf.mxu0 }
 0x278   :  { %v2568_v8 = vpack.c.bf16 %v4412_v51, %v4411_v5  ;;  %v4860_v51 = vld [vmem:[#allocation2 + $0x78] sm:$0xff]  }
 0x279   :  { %v1436_v17 = vpop.f32.mrf.mxu0  ;;  %4512 = vmatpush3.bf16.xpose.msra.mxu1 %v1945_v24 }
 0x27a   :  { %4529 = vmatprep.subr.bf16.mxu1 %v2158_v52  ;;  %v2567_v19 = vpack.c.bf16 %v1436_v17, %v1433_v50 }
 0x27b   :  { %v4415_v53 = vpop.f32.mrf.mxu0 }
 0x27d   :  { %v1449_v54 = vpop.f32.mrf.mxu0 }
 0x27f   :  { %v4416_v55 = vpop.f32.mrf.mxu0 }
 0x280   :  { %v2570_v57 = vpack.c.bf16 %v4416_v55, %v4415_v53  ;;  %4514 = vmatmul.mubr.bf16.vlgmr.msra.gmra.mxu1 %v4854_v63  ;;  %v4861_v53 = vld [vmem:[#allocation2 + $0x80] sm:$0xff]  }
 0x281   :  { %v1452_v10 = vpop.f32.mrf.mxu0  ;;  %4517 = vmatprep.mubr.bf16.mxu1 %v4855_v12  ;;  %4530 = vmatpush3.bf16.xpose.msra.mxu1 %v2158_v52 }
 0x282   :  { %v2569_v15 = vpack.c.bf16 %v1452_v10, %v1449_v54  ;;  %4593 = vmatprep.subr.bf16.mxu0 %v2570_v57  ;;  %4531 = vmatprep.subr.bf16.mxu1 %v2157_v56 }
 0x283   :  { %v4419_v59 = vpop.f32.mrf.mxu0  ;;  %4594 = vmatpush3.bf16.xpose.msra.mxu0 %v2570_v57  ;;  %v2153_v57 = vpack.c.bf16 %v5399_v13, %v5395_v20 }
 0x284   :  { %4595 = vmatprep.subr.bf16.mxu0 %v2569_v15 }
 0x285   :  { %v1465_v7 = vpop.f32.mrf.mxu0 }
 0x287   :  { %v4420_v3 = vpop.f32.mrf.mxu0 }
 0x288   :  { %v5462_v58 = vpack.c.bf16 %v4420_v3, %v4419_v59  ;;  %4518 = vmatmul.mubr.bf16.gmra.mxu1 %v4856_v27 }
 0x289   :  { %v1468_v28 = vpop.f32.mrf.mxu0  ;;  %4521 = vmatprep.mubr.bf16.mxu1 %v4857_v29  ;;  %4532 = vmatpush3.bf16.xpose.msra.mxu1 %v2157_v56 }
 0x28a   :  { %v5464_v33 = vpack.c.bf16 %v1468_v28, %v1465_v7  ;;  %4533 = vmatprep.subr.bf16.mxu1 %v5405_v11 }
 0x28b   :  { %v4423_v49 = vpop.f32.mrf.mxu0  ;;  %4596 = vmatpush3.bf16.xpose.msra.mxu0 %v2569_v15 }
 0x28c   :  { %4597 = vmatprep.subr.bf16.mxu0 %v2568_v8 }
 0x28d   :  { %v1481_v60 = vpop.f32.mrf.mxu0 }
 0x28f   :  { %v4424_v34 = vpop.f32.mrf.mxu0 }
 0x290   :  { %v5467_v4 = vpack.c.bf16 %v4424_v34, %v4423_v49  ;;  %4522 = vmatmul.mubr.bf16.gmra.mxu1 %v4858_v30  ;;  %v4864_v34 = vld [vmem:[#allocation2 + $0x90] sm:$0xff]  }
 0x291   :  { %v1484_v32 = vpop.f32.mrf.mxu0  ;;  %4525 = vmatprep.mubr.bf16.mxu1 %v4859_v40  ;;  %4534 = vmatpush3.bf16.xpose.msra.mxu1 %v5405_v11  ;;  %v4865_v30 = vld [vmem:[#allocation2 + $0x110] sm:$0xff]  }
 0x292   :  { %v5471_v23 = vpack.c.bf16 %v1484_v32, %v1481_v60  ;;  %4535 = vmatprep.subr.bf16.mxu1 %v2155_v62 }
 0x293   :  { %v4427_v44 = vpop.f32.mrf.mxu0  ;;  %4598 = vmatpush3.bf16.xpose.msra.mxu0 %v2568_v8 }
 0x294   :  { %4599 = vmatprep.subr.bf16.mxu0 %v2567_v19 }
 0x295   :  { %v1497_v9 = vpop.f32.mrf.mxu0 }
 0x297   :  { %v4428_v24 = vpop.f32.mrf.mxu0 }
 0x298   :  { %v5474_v5 = vpack.c.bf16 %v4428_v24, %v4427_v44  ;;  %4526 = vmatmul.mubr.bf16.gmra.mxu1 %v4860_v51  ;;  %v4868_v24 = vld [vmem:[#allocation2 + $0xa0] sm:$0xff]  }
 0x299   :  { %v1500_v52 = vpop.f32.mrf.mxu0  ;;  %4536 = vmatpush3.bf16.xpose.msra.mxu1 %v2155_v62  ;;  %4545 = vmatprep.mubr.bf16.mxu1 %v4861_v53  ;;  %v4870_v53 = vld [vmem:[#allocation2 + $0xa8] sm:$0xff]  }
 0x29a   :  { %v5476_v54 = vpack.c.bf16 %v1500_v52, %v1497_v9  ;;  %4537 = vmatprep.subr.bf16.mxu1 %v5397_v45  ;;  %v4867_v9 = vld [vmem:[#allocation2 + $0x118] sm:$0xff]   ;;  %v4869_v52 = vld [vmem:[#allocation2 + $0x120] sm:$0xff]  }
 0x29b   :  { %v4431_v47 = vpop.f32.mrf.mxu0  ;;  %4600 = vmatpush3.bf16.xpose.msra.mxu0 %v2567_v19  ;;  %v4866_v19 = vld [vmem:[#allocation2 + $0x98] sm:$0xff]  }
 0x29c   :  { %4601 = vmatprep.subr.bf16.mxu0 %v2566_v14 }
 0x29d   :  { %v1513_v11 = vpop.f32.mrf.mxu0 }
 0x29f   :  { %v4432_v50 = vpop.f32.mrf.mxu0 }
 0x2a0   :  { %v5481_v17 = vpack.c.bf16 %v4432_v50, %v4431_v47  ;;  %v4872_v47 = vld [vmem:[#allocation2 + $0xb0] sm:$0xff]  }
 0x2a1   :  { %v1516_v55 = vpop.f32.mrf.mxu0  ;;  %4538 = vmatpush3.bf16.xpose.msra.mxu1 %v5397_v45 }
 0x2a2   :  { %v5485_v63 = vpack.c.bf16 %v1516_v55, %v1513_v11  ;;  %4539 = vmatprep.subr.bf16.mxu1 %v2153_v57  ;;  %v4873_v11 = vld [vmem:[#allocation2 + $0x130] sm:$0xff]   ;;  %v4875_v55 = vld [vmem:[#allocation2 + $0x138] sm:$0xff]  }
 0x2a3   :  { %v4435_v21 = vpop.f32.mrf.mxu0  ;;  %4602 = vmatpush3.bf16.xpose.msra.mxu0 %v2566_v14  ;;  %v4871_v14 = vld [vmem:[#allocation2 + $0x128] sm:$0xff]  }
 0x2a4   :  { %4603 = vmatprep.subr.bf16.mxu0 %v2565_v16 }
 0x2a5   :  { %v1529_v10 = vpop.f32.mrf.mxu0 }
 0x2a7   :  { %v4436_v12 = vpop.f32.mrf.mxu0 }
 0x2a8   :  { %v5490_v56 = vpack.c.bf16 %v4436_v12, %v4435_v21  ;;  %v4880_v12 = vld [vmem:[#allocation2 + $0xd0] sm:$0xff]  }
 0x2a9   :  { %v1532_v15 = vpop.f32.mrf.mxu0  ;;  %4540 = vmatpush3.bf16.xpose.msra.mxu1 %v2153_v57  ;;  %v4876_v57 = vld [vmem:[#allocation2 + $0xc0] sm:$0xff]  }
 0x2aa   :  { %v5492_v59 = vpack.c.bf16 %v1532_v15, %v1529_v10  ;;  %4541 = vmatprep.subr.bf16.mxu1 %v5390_v42  ;;  %v4879_v10 = vld [vmem:[#allocation2 + $0x188] sm:$0xff]   ;;  %v1660_v15 = vadd.s32 24, %v5100_v36 }
 0x2ab   :  { %v5494_v7 = vpop.f32.mrf.mxu0  ;;  %4604 = vmatpush3.bf16.xpose.msra.mxu0 %v2565_v16  ;;  %v4877_v16 = vld [vmem:[#allocation2 + $0x180] sm:$0xff]  }
 0x2ac   :  { %4605 = vmatprep.subr.bf16.mxu0 %v5442_v46 }
 0x2ad   :  { %v5498_v20 = vpop.f32.mrf.mxu0 }
 0x2af   :  { %v5500_v45 = vpop.f32.mrf.mxu0 }
 0x2b0   :  { %v2978_v21 = vpack.c.bf16 %v5500_v45, %v5494_v7 }
 0x2b1   :  { %v5502_v13 = vpop.f32.mrf.mxu0  ;;  %4542 = vmatpush3.bf16.xpose.msra.mxu1 %v5390_v42  ;;  %v4863_v42 = vld [vmem:[#allocation2 + $0x108] sm:$0xff]  }
 0x2b2   :  { %4543 = vmatprep.subr.bf16.mxu1 %v2151_v6 }
 0x2b3   :  { %v4443_v25 = vpop.f32.mrf.mxu0  ;;  %4606 = vmatpush3.bf16.xpose.msra.mxu0 %v5442_v46 }
 0x2b4   :  { %4607 = vmatprep.subr.bf16.mxu0 %v5444_v48 }
 0x2b5   :  { %v1561_v3 = vpop.f32.mrf.mxu0 }
 0x2b7   :  { %v4444_v27 = vpop.f32.mrf.mxu0 }
 0x2b9   :  { %v1564_v28 = vpop.f32.mrf.mxu0  ;;  %4544 = vmatpush3.bf16.xpose.msra.mxu1 %v2151_v6 }
 0x2ba   :  { %4561 = vmatprep.subr.bf16.mxu1 %v5435_v39  ;;  %v2979_v50 = vpack.c.bf16 %v1564_v28, %v1561_v3  ;;  %v4882_v28 = vld [vmem:[#allocation2 + $0xd8] sm:$0xff]  }
 0x2bb   :  { %v4447_v29 = vpop.f32.mrf.mxu0  ;;  %4608 = vmatpush3.bf16.xpose.msra.mxu0 %v5444_v48 }
 0x2bd   :  { %v1577_v8 = vpop.f32.mrf.mxu0 }
 0x2bf   :  { %v4448_v49 = vpop.f32.mrf.mxu0 }
 0x2c0   :  { %v2982_v22 = vpack.c.bf16 %v4448_v49, %v4447_v29  ;;  %4546 = vmatmul.mubr.bf16.vlgmr.msra.gmra.mxu1 %v4862_v43  ;;  %v4883_v49 = vld [vmem:[#allocation2 + $0x198] sm:$0xff]  }
 0x2c1   :  { %v1580_v60 = vpop.f32.mrf.mxu0  ;;  %4549 = vmatprep.mubr.bf16.mxu1 %v4864_v34  ;;  %4562 = vmatpush3.bf16.xpose.msra.mxu1 %v5435_v39  ;;  %v2980_v39 = vpack.c.bf16 %v4444_v27, %v4443_v25  ;;  %v1663_v27 = vadd.s32 48, %v5100_v36  ;;  %v1664_v34 = vadd.s32 56, %v5100_v36 }
 0x2c2   :  { %v2981_v46 = vpack.c.bf16 %v1580_v60, %v1577_v8  ;;  %4657 = vmatprep.subr.bf16.mxu0 %v2982_v22  ;;  %4610 = vmatmul.mubr.bf16.vlgmr.msra.gmra.mxu0 %v4863_v42  ;;  %v4885_v42 = vld [vmem:[#allocation2 + $0x1a0] sm:$0xff]  }
 0x2c3   :  { %v4451_v32 = vpop.f32.mrf.mxu0  ;;  %4613 = vmatprep.mubr.bf16.mxu0 %v4865_v30  ;;  %4658 = vmatpush3.bf16.xpose.msra.mxu0 %v2982_v22  ;;  %v4884_v22 = vld [vmem:[#allocation2 + $0xe0] sm:$0xff]  }
 0x2c4   :  { %4563 = vmatprep.subr.bf16.mxu1 %v5439_v41  ;;  %4659 = vmatprep.subr.bf16.mxu0 %v2981_v46 }
 0x2c5   :  { %v1593_v48 = vpop.f32.mrf.mxu0 }
 0x2c7   :  { %v4452_v40 = vpop.f32.mrf.mxu0 }
 0x2c8   :  { %v5513_v62 = vpack.c.bf16 %v4452_v40, %v4451_v32  ;;  %4550 = vmatmul.mubr.bf16.gmra.mxu1 %v4866_v19  ;;  %v1665_v40 = vadd.s32 64, %v5100_v36 }
 0x2c9   :  { %v1596_v44 = vpop.f32.mrf.mxu0  ;;  %4553 = vmatprep.mubr.bf16.mxu1 %v4868_v24  ;;  %4564 = vmatpush3.bf16.xpose.msra.mxu1 %v5439_v41  ;;  %v4874_v41 = vld [vmem:[#allocation2 + $0xb8] sm:$0xff]  }
 0x2ca   :  { %v5515_v51 = vpack.c.bf16 %v1596_v44, %v1593_v48  ;;  %4614 = vmatmul.mubr.bf16.gmra.mxu0 %v4867_v9  ;;  %4565 = vmatprep.subr.bf16.mxu1 %v5430_v31 }
 0x2cb   :  { %4617 = vmatprep.mubr.bf16.mxu0 %v4869_v52  ;;  %4660 = vmatpush3.bf16.xpose.msra.mxu0 %v2981_v46  ;;  %v1666_v52 = vadd.s32 72, %v5100_v36 }
 0x2cc   :  { %4661 = vmatprep.subr.bf16.mxu0 %v2980_v39 }
 0x2d0   :  { %4554 = vmatmul.mubr.bf16.gmra.mxu1 %v4870_v53  ;;  %v5591_v53 = vpop.f32.mrf.mxu0 }
 0x2d1   :  { %4557 = vmatprep.mubr.bf16.mxu1 %v4872_v47  ;;  %4566 = vmatpush3.bf16.xpose.msra.mxu1 %v5430_v31  ;;  %v2977_v31 = vpack.c.bf16 %v5502_v13, %v5498_v20  ;;  %v1662_v13 = vadd.s32 40, %v5100_v36 }
 0x2d2   :  { %4618 = vmatmul.mubr.bf16.gmra.mxu0 %v4871_v14  ;;  %4567 = vmatprep.subr.bf16.mxu1 %v5432_v38 }
 0x2d3   :  { %4621 = vmatprep.mubr.bf16.mxu0 %v4873_v11  ;;  %4662 = vmatpush3.bf16.xpose.msra.mxu0 %v2980_v39  ;;  %v1667_v11 = vadd.s32 80, %v5100_v36 }
 0x2d4   :  { %4663 = vmatprep.subr.bf16.mxu0 %v2979_v50 }
 0x2d8   :  { %4558 = vmatmul.mubr.bf16.gmra.mxu1 %v4874_v41 }
 0x2d9   :  { %4577 = vmatprep.mubr.bf16.mxu1 %v4876_v57  ;;  %4568 = vmatpush3.bf16.xpose.msra.mxu1 %v5432_v38  ;;  %v2357_v38 = vpack.c.bf16 %v5422_v18, %v5418_v1  ;;  %v5543_v1 = vand.u32 127, %v212_v35  ;;  %v1661_v35 = vadd.s32 32, %v5100_v36  ;;  %v4887_v57 = vld [vmem:[#allocation2 + $0x1a8] sm:$0xff]  }
 0x2da   :  { %4622 = vmatmul.mubr.bf16.gmra.mxu0 %v4875_v55  ;;  %4569 = vmatprep.subr.bf16.mxu1 %v5424_v61 }
 0x2db   :  { %4673 = vmatprep.mubr.bf16.mxu0 %v4877_v16  ;;  %4664 = vmatpush3.bf16.xpose.msra.mxu0 %v2979_v50  ;;  %vm1675_vm1 = vcmp.eq.s32.totalorder %v5100_v36, %v5543_v1  ;;  %vm1678_vm4 = vcmp.eq.s32.totalorder %v1660_v15, %v5543_v1  ;;  %vm1679_vm5 = vcmp.eq.s32.totalorder %v1661_v35, %v5543_v1  ;;  %v4886_v50 = vld [vmem:[#allocation2 + $0xe8] sm:$0xff]   ;;  %v4888_v16 = vld [vmem:[#allocation2 + $0xf0] sm:$0xff]  }
 0x2dc   :  { %4665 = vmatprep.subr.bf16.mxu0 %v2978_v21  ;;  %v5553_v7 = vsel %vm1675_vm1, 1.0, %v4999_v0  ;;  %v5569_v29 = vsel %vm1678_vm4, 1.0, %v4999_v0  ;;  %vm1680_vm6 = vcmp.eq.s32.totalorder %v1662_v13, %v5543_v1  ;;  %v5575_v46 = vsel %vm1679_vm5, 1.0, %v4999_v0 }
 0x2dd   :  { %vm1681_vm7 = vcmp.eq.s32.totalorder %v1663_v27, %v5543_v1  ;;  %v5583_v44 = vsel %vm1680_vm6, 1.0, %v4999_v0  ;;  %vm1682_vm8 = vcmp.eq.s32.totalorder %v1664_v34, %v5543_v1  ;;  %vm1683_vm9 = vcmp.eq.s32.totalorder %v1665_v40, %v5543_v1 }
 0x2de   :  { %v5589_v39 = vsel %vm1681_vm7, 1.0, %v4999_v0  ;;  %v5597_v41 = vsel %vm1682_vm8, 1.0, %v4999_v0  ;;  %vm1684_vm10 = vcmp.eq.s32.totalorder %v1666_v52, %v5543_v1  ;;  %vm1685_vm11 = vcmp.eq.s32.totalorder %v1667_v11, %v5543_v1 }
 0x2df   :  { %v1670_v13 = vadd.s32 104, %v5100_v36  ;;  %vm3313_vm4 = vcmask 1043456   ;;  %vm3315_vm5 = vcmask 1044480   ;;  %vm3317_vm6 = vcmask 1045504  }
 0x2e0   :  { %vm3319_vm7 = vcmask 1046528  }
 0x2e1   :  { %4570 = vmatpush3.bf16.xpose.msra.mxu1 %v5424_v61  ;;  %v1658_v61 = vadd.s32 8, %v5100_v36  ;;  %vm1688_vm14 = vcmp.eq.s32.totalorder %v1670_v13, %v5543_v1  ;;  %v4894_v13 = vld [vmem:[#allocation2 + $0x150] sm:$0xff]  }
 0x2e2   :  { %4571 = vmatprep.subr.bf16.mxu1 %v5428_v26 }
 0x2e3   :  { %4666 = vmatpush3.bf16.xpose.msra.mxu0 %v2978_v21  ;;  %vm1676_vm2 = vcmp.eq.s32.totalorder %v1658_v61, %v5543_v1  ;;  %v1668_v61 = vadd.s32 88, %v5100_v36 }
 0x2e4   :  { %4667 = vmatprep.subr.bf16.mxu0 %v2977_v31  ;;  %v5557_v45 = vsel %vm1676_vm2, 1.0, %v4999_v0  ;;  %vm3309_vm2 = vcmask 1041408  }
 0x2e5   :  { %vm1686_vm12 = vcmp.eq.s32.totalorder %v1668_v61, %v5543_v1 }
 0x2e9   :  { %4572 = vmatpush3.bf16.xpose.msra.mxu1 %v5428_v26  ;;  %v1659_v26 = vadd.s32 16, %v5100_v36 }
 0x2ea   :  { %4573 = vmatprep.subr.bf16.mxu1 %v5420_v2 }
 0x2eb   :  { %4668 = vmatpush3.bf16.xpose.msra.mxu0 %v2977_v31  ;;  %vm1677_vm3 = vcmp.eq.s32.totalorder %v1659_v26, %v5543_v1  ;;  %v5603_v26 = vsel %vm1683_vm9, 1.0, %v4999_v0 }
 0x2ec   :  { %4669 = vmatprep.subr.bf16.mxu0 %v5490_v56  ;;  %v5562_v6 = vsel %vm1677_vm3, 1.0, %v4999_v0  ;;  %vm3311_vm3 = vcmask 1042432  }
 0x2f1   :  { %4574 = vmatpush3.bf16.xpose.msra.mxu1 %v5420_v2  ;;  %v4878_v2 = vld [vmem:[#allocation2 + $0xc8] sm:$0xff]  }
 0x2f2   :  { %4575 = vmatprep.subr.bf16.mxu1 %v2357_v38 }
 0x2f3   :  { %4670 = vmatpush3.bf16.xpose.msra.mxu0 %v5490_v56  ;;  %v4881_v56 = vld [vmem:[#allocation2 + $0x190] sm:$0xff]  }
 0x2f4   :  { %4671 = vmatprep.subr.bf16.mxu0 %v5492_v59 }
 0x2f9   :  { %4576 = vmatpush3.bf16.xpose.msra.mxu1 %v2357_v38  ;;  %v4889_v38 = vld [vmem:[#allocation2 + $0x1b0] sm:$0xff]  }
 0x2fa   :  { %4625 = vmatprep.subr.bf16.mxu1 %v5481_v17 }
 0x2fb   :  { %4672 = vmatpush3.bf16.xpose.msra.mxu0 %v5492_v59 }
 0x2fc   :  { %4721 = vmatprep.subr.mxu0 %v4999_v0 }
 0x300   :  { %v4483_v18 = vpop.f32.mrf.mxu1  ;;  %4578 = vmatmul.mubr.bf16.vlgmr.msra.gmra.mxu1 %v4878_v2 }
 0x301   :  { %4581 = vmatprep.mubr.bf16.mxu1 %v4880_v12  ;;  %4626 = vmatpush3.bf16.xpose.msra.mxu1 %v5481_v17  ;;  %v1894_v43 = vmul.f32 %v4483_v18, %v5562_v6  ;;  %v5605_v18 = vpop.f32.mrf.mxu0 }
 0x302   :  { %4674 = vmatmul.mubr.bf16.vlgmr.msra.gmra.mxu0 %v4879_v10  ;;  %v1829_v59 = vpop.f32.mrf.mxu1  ;;  %4627 = vmatprep.subr.bf16.mxu1 %v5485_v63 }
 0x303   :  { %4677 = vmatprep.mubr.bf16.mxu0 %v4881_v56  ;;  %v1892_v25 = vmul.f32 %v5553_v7, %v1829_v59  ;;  %v1669_v56 = vadd.s32 96, %v5100_v36  ;;  %v5613_v59 = vsel %vm1684_vm10, 1.0, %v4999_v0 }
 0x304   :  { %v4484_v20 = vpop.f32.mrf.mxu1 }
 0x305   :  { %v1895_v32 = vmul.f32 %v4484_v20, %v5569_v29  ;;  %vm1687_vm13 = vcmp.eq.s32.totalorder %v1669_v56, %v5543_v1 }
 0x306   :  { %v1832_v17 = vpop.f32.mrf.mxu1 }
 0x307   :  { %v1893_v3 = vmul.f32 %v5557_v45, %v1832_v17  ;;  %v5619_v17 = vsel %vm1685_vm11, 1.0, %v4999_v0 }
 0x308   :  { %v4487_v8 = vpop.f32.mrf.mxu1  ;;  %4582 = vmatmul.mubr.bf16.gmra.mxu1 %v4882_v28  ;;  %v1671_v28 = vadd.s32 112, %v5100_v36 }
 0x309   :  { %v1908_v60 = vadd.f32 %v1893_v3, %v1892_v25  ;;  %4585 = vmatprep.mubr.bf16.mxu1 %v4884_v22  ;;  %4628 = vmatpush3.bf16.xpose.msra.mxu1 %v5485_v63  ;;  %v1898_v21 = vmul.f32 %v4487_v8, %v5589_v39  ;;  %v5621_v25 = vpop.f32.mrf.mxu0  ;;  %v4890_v8 = vld [vmem:[#allocation2 + $0xf8] sm:$0xff]  }
 0x30a   :  { %4678 = vmatmul.mubr.bf16.gmra.mxu0 %v4883_v49  ;;  %v1845_v30 = vpop.f32.mrf.mxu1  ;;  %4629 = vmatprep.subr.bf16.mxu1 %v5474_v5  ;;  %v5627_v49 = vsel %vm1686_vm12, 1.0, %v4999_v0  ;;  %vm1689_vm15 = vcmp.eq.s32.totalorder %v1671_v28, %v5543_v1 }
 0x30b   :  { %v1909_v48 = vadd.f32 %v1908_v60, %v1894_v43  ;;  %4681 = vmatprep.mubr.bf16.mxu0 %v4885_v42  ;;  %v1896_v9 = vmul.f32 %v5575_v46, %v1845_v30  ;;  %v4891_v43 = vld [vmem:[#allocation2 + $0x1b8] sm:$0xff]   ;;  %v4892_v60 = vld [vmem:[#allocation2 + $0x140] sm:$0xff]   ;;  %v1672_v30 = vadd.s32 120, %v5100_v36  ;;  %v5635_v40 = vpop.f32.mrf.mxu0 }
 0x30c   :  { %v4488_v19 = vpop.f32.mrf.mxu1 }
 0x30d   :  { %v1910_v24 = vadd.f32 %v1909_v48, %v1895_v32  ;;  %v1899_v10 = vmul.f32 %v4488_v19, %v5597_v41  ;;  %v5633_v32 = vsel %vm1687_vm13, 1.0, %v4999_v0  ;;  %vm1690_vm1 = vcmp.eq.s32.totalorder %v1672_v30, %v5543_v1  ;;  %v4459_v11 = vpop.f32.mrf.mxu0 }
 0x30e   :  { %v1848_v63 = vpop.f32.mrf.mxu1 }
 0x30f   :  { %v1911_v14 = vadd.f32 %v1910_v24, %v1896_v9  ;;  %v1897_v47 = vmul.f32 %v5583_v44, %v1848_v63  ;;  %v5644_v24 = vsel %vm1688_vm14, 1.0, %v4999_v0 }
 0x310   :  { %v4491_v55 = vpop.f32.mrf.mxu1  ;;  %4586 = vmatmul.mubr.bf16.gmra.mxu1 %v4886_v50 }
 0x311   :  { %v1912_v31 = vadd.f32 %v1911_v14, %v1897_v47  ;;  %4589 = vmatprep.mubr.bf16.mxu1 %v4888_v16  ;;  %4630 = vmatpush3.bf16.xpose.msra.mxu1 %v5474_v5  ;;  %v1902_v42 = vmul.f32 %v4491_v55, %v5619_v17  ;;  %v5649_v14 = vsel %vm1689_vm15, 1.0, %v4999_v0  ;;  %v5653_v55 = vsel %vm1690_vm1, 1.0, %v4999_v0 }
 0x312   :  { %4682 = vmatmul.mubr.bf16.gmra.mxu0 %v4887_v57  ;;  %v1861_v2 = vpop.f32.mrf.mxu1  ;;  %4631 = vmatprep.subr.bf16.mxu1 %v5476_v54 }
 0x313   :  { %v1913_v12 = vadd.f32 %v1912_v31, %v1898_v21  ;;  %4685 = vmatprep.mubr.bf16.mxu0 %v4889_v38  ;;  %v1900_v35 = vmul.f32 %v5603_v26, %v1861_v2  ;;  %v1625_v21 = vpop.f32.mrf.mxu0 }
 0x314   :  { %v4492_v15 = vpop.f32.mrf.mxu1 }
 0x315   :  { %v1914_v20 = vadd.f32 %v1913_v12, %v1899_v10  ;;  %v1903_v19 = vmul.f32 %v4492_v15, %v5627_v49  ;;  %v4460_v61 = vpop.f32.mrf.mxu0 }
 0x316   :  { %v1864_v5 = vpop.f32.mrf.mxu1 }
 0x317   :  { %v1915_v3 = vadd.f32 %v1914_v20, %v1900_v35  ;;  %v1901_v27 = vmul.f32 %v5613_v59, %v1864_v5  ;;  %v1628_v2 = vpop.f32.mrf.mxu0  ;;  %v4893_v20 = vld [vmem:[#allocation2 + $0x148] sm:$0xff]  }
 0x318   :  { %v4495_v22 = vpop.f32.mrf.mxu1  ;;  %4590 = vmatmul.mubr.bf16.gmra.mxu1 %v4890_v8 }
 0x319   :  { %v1916_v34 = vadd.f32 %v1915_v3, %v1901_v27  ;;  %4641 = vmatprep.mubr.bf16.mxu1 %v4892_v60  ;;  %4632 = vmatpush3.bf16.xpose.msra.mxu1 %v5476_v54  ;;  %v1906_v57 = vmul.f32 %v4495_v22, %v5649_v14  ;;  %v4463_v10 = vpop.f32.mrf.mxu0  ;;  %v4895_v22 = vld [vmem:[#allocation2 + $0x158] sm:$0xff]   ;;  %v4896_v60 = vld [vmem:[#allocation2 + $0x160] sm:$0xff]  }
 0x31a   :  { %4686 = vmatmul.mubr.bf16.gmra.mxu0 %v4891_v43  ;;  %v1877_v48 = vpop.f32.mrf.mxu1  ;;  %4633 = vmatprep.subr.bf16.mxu1 %v5467_v4 }
 0x31b   :  { %v1917_v9 = vadd.f32 %v1916_v34, %v1902_v42  ;;  %4753 = vmatprep.mubr.msk.f32.mxu0 %vm5000_vm0, %v4999_v0  ;;  %v1904_v52 = vmul.f32 %v5633_v32, %v1877_v48  ;;  %v1641_v12 = vpop.f32.mrf.mxu0  ;;  %v3170_v42 = vpack.c.bf16 %v4460_v61, %v4459_v11  ;;  %vm3307_vm0 = vcmask 1040384  }
 0x31c   :  { %v4496_v36 = vpop.f32.mrf.mxu1 }
 0x31d   :  { %v1918_v63 = vadd.f32 %v1917_v9, %v1903_v19  ;;  %v1907_v31 = vmul.f32 %v4496_v36, %v5653_v55  ;;  %v4464_v56 = vpop.f32.mrf.mxu0 }
 0x31e   :  { %v1880_v47 = vpop.f32.mrf.mxu1  ;;  %v3172_v15 = vpack.c.bf16 %v4464_v56, %v4463_v10 }
 0x31f   :  { %v1919_v54 = vadd.f32 %v1918_v63, %v1904_v52  ;;  %v1905_v50 = vmul.f32 %v5644_v24, %v1880_v47 }
 0x321   :  { %v1920_v16 = vadd.f32 %v1919_v54, %v1905_v50  ;;  %4634 = vmatpush3.bf16.xpose.msra.mxu1 %v5467_v4  ;;  %v1644_v4 = vpop.f32.mrf.mxu0  ;;  %v4897_v50 = vld [vmem:[#allocation2 + $0x168] sm:$0xff]  }
 0x322   :  { %4635 = vmatprep.subr.bf16.mxu1 %v5471_v23  ;;  %v3171_v5 = vpack.c.bf16 %v1644_v4, %v1641_v12 }
 0x323   :  { %v1921_v38 = vadd.f32 %v1920_v16, %v1906_v57  ;;  %v4898_v16 = vld [vmem:[#allocation2 + $0x170] sm:$0xff]  }
 0x325   :  { %v5659_v1 = vadd.f32 %v1921_v38, %v1907_v31  ;;  %v3169_v31 = vpack.c.bf16 %v1628_v2, %v1625_v21 }
 0x329   :  { %4636 = vmatpush3.bf16.xpose.msra.mxu1 %v5471_v23 }
 0x32a   :  { %4637 = vmatprep.subr.bf16.mxu1 %v5462_v58 }
 0x331   :  { %4638 = vmatpush3.bf16.xpose.msra.mxu1 %v5462_v58 }
 0x332   :  { %4639 = vmatprep.subr.bf16.mxu1 %v5464_v33 }
 0x339   :  { %4640 = vmatpush3.bf16.xpose.msra.mxu1 %v5464_v33 }
 0x33a   :  { %4689 = vmatprep.subr.bf16.mxu1 %v3172_v15 }
 0x340   :  { %v4515_v35 = vpop.f32.mrf.mxu1  ;;  %4642 = vmatmul.mubr.bf16.vlgmr.msra.gmra.mxu1 %v4893_v20 }
 0x341   :  { %4645 = vmatprep.mubr.bf16.mxu1 %v4894_v13  ;;  %4690 = vmatpush3.bf16.xpose.msra.mxu1 %v3172_v15  ;;  %v2100_v33 = vmul.f32 %v4515_v35, %v5562_v6 }
 0x342   :  { %v2035_v23 = vpop.f32.mrf.mxu1  ;;  %4691 = vmatprep.subr.bf16.mxu1 %v3171_v5 }
 0x343   :  { %v2098_v58 = vmul.f32 %v5553_v7, %v2035_v23  ;;  %v3168_v23 = vpack.c.bf16 %v5621_v25, %v5591_v53 }
 0x344   :  { %v4516_v3 = vpop.f32.mrf.mxu1 }
 0x345   :  { %v2101_v30 = vmul.f32 %v4516_v3, %v5569_v29 }
 0x346   :  { %v2038_v27 = vpop.f32.mrf.mxu1 }
 0x347   :  { %v2099_v28 = vmul.f32 %v5557_v45, %v2038_v27 }
 0x348   :  { %v4519_v8 = vpop.f32.mrf.mxu1  ;;  %4646 = vmatmul.mubr.bf16.gmra.mxu1 %v4895_v22  ;;  %v1923_v22 = vrot.slane %v5659_v1, 4 }
 0x349   :  { %v2114_v43 = vadd.f32 %v2099_v28, %v2098_v58  ;;  %4649 = vmatprep.mubr.bf16.mxu1 %v4896_v60  ;;  %4692 = vmatpush3.bf16.xpose.msra.mxu1 %v3171_v5  ;;  %v2104_v11 = vmul.f32 %v4519_v8, %v5589_v39  ;;  %v4899_v5 = vld [vmem:[#allocation2 + $0x178] sm:$0xff]   ;;  %v4900_v28 = vld [vmem:[#allocation2 + $0x1c0] sm:$0xff]  }
 0x34a   :  { %v2051_v34 = vpop.f32.mrf.mxu1  ;;  %4693 = vmatprep.subr.bf16.mxu1 %v3170_v42  ;;  %v1924_v53 = vadd.f32 %v1923_v22, %v5659_v1 }
 0x34b   :  { %v2115_v48 = vadd.f32 %v2114_v43, %v2100_v33  ;;  %v2102_v9 = vmul.f32 %v5575_v46, %v2051_v34 }
 0x34c   :  { %v4520_v19 = vpop.f32.mrf.mxu1 }
 0x34d   :  { %v2116_v36 = vadd.f32 %v2115_v48, %v2101_v30  ;;  %v2105_v61 = vmul.f32 %v4520_v19, %v5597_v41  ;;  %v3167_v48 = vpack.c.bf16 %v5635_v40, %v5605_v18 }
 0x34e   :  { %v2054_v52 = vpop.f32.mrf.mxu1 }
 0x34f   :  { %v2117_v63 = vadd.f32 %v2116_v36, %v2102_v9  ;;  %v2103_v47 = vmul.f32 %v5583_v44, %v2054_v52  ;;  %v1925_v36 = vrot.slane %v1924_v53, 2 }
 0x350   :  { %v4523_v54 = vpop.f32.mrf.mxu1  ;;  %4650 = vmatmul.mubr.bf16.gmra.mxu1 %v4897_v50 }
 0x351   :  { %v2118_v57 = vadd.f32 %v2117_v63, %v2103_v47  ;;  %4653 = vmatprep.mubr.bf16.mxu1 %v4898_v16  ;;  %4694 = vmatpush3.bf16.xpose.msra.mxu1 %v3170_v42  ;;  %v2108_v21 = vmul.f32 %v4523_v54, %v5619_v17  ;;  %v1926_v47 = vadd.f32 %v1925_v36, %v1924_v53 }
 0x352   :  { %v2067_v38 = vpop.f32.mrf.mxu1  ;;  %4695 = vmatprep.subr.bf16.mxu1 %v3169_v31 }
 0x353   :  { %v2119_v10 = vadd.f32 %v2118_v57, %v2104_v11  ;;  %v2106_v56 = vmul.f32 %v5603_v26, %v2067_v38  ;;  %v1927_v1 = vrot.slane %v1926_v47, 1  ;;  %v4901_v38 = vld [vmem:[#allocation2 + $0x1c8] sm:$0xff]  }
 0x354   :  { %v4524_v12 = vpop.f32.mrf.mxu1 }
 0x355   :  { %v2120_v15 = vadd.f32 %v2119_v10, %v2105_v61  ;;  %v2109_v27 = vmul.f32 %v4524_v12, %v5627_v49  ;;  %v1928_v16 = vadd.f32 %v1927_v1, %v1926_v47  ;;  %v4902_v10 = vld [vmem:[#allocation2 + $0x1d0] sm:$0xff]  }
 0x356   :  { %v2070_v4 = vpop.f32.mrf.mxu1 }
 0x357   :  { %v2121_v35 = vadd.f32 %v2120_v15, %v2106_v56  ;;  %v2107_v20 = vmul.f32 %v5613_v59, %v2070_v4 }
 0x358   :  { %v4527_v13 = vpop.f32.mrf.mxu1  ;;  %4654 = vmatmul.mubr.bf16.gmra.mxu1 %v4899_v5 }
 0x359   :  { %v2122_v2 = vadd.f32 %v2121_v35, %v2107_v20  ;;  %4696 = vmatpush3.bf16.xpose.msra.mxu1 %v3169_v31  ;;  %4705 = vmatprep.mubr.bf16.mxu1 %v4900_v28  ;;  %v2112_v25 = vmul.f32 %v4527_v13, %v5649_v14  ;;  %v4903_v13 = vld [vmem:[#allocation2 + $0x1d8] sm:$0xff]  }
 0x35a   :  { %v2083_v3 = vpop.f32.mrf.mxu1  ;;  %4697 = vmatprep.subr.bf16.mxu1 %v3168_v23 }
 0x35b   :  { %v2123_v58 = vadd.f32 %v2122_v2, %v2108_v21  ;;  %v2110_v33 = vmul.f32 %v5633_v32, %v2083_v3  ;;  %v4904_v2 = vld [vmem:[#allocation2 + $0x1e0] sm:$0xff]  }
 0x35c   :  { %v4528_v8 = vpop.f32.mrf.mxu1 }
 0x35d   :  { %v2124_v43 = vadd.f32 %v2123_v58, %v2109_v27  ;;  %v2113_v19 = vmul.f32 %v4528_v8, %v5653_v55 }
 0x35e   :  { %v2086_v60 = vpop.f32.mrf.mxu1 }
 0x35f   :  { %v2125_v42 = vadd.f32 %v2124_v43, %v2110_v33  ;;  %v2111_v34 = vmul.f32 %v5644_v24, %v2086_v60  ;;  %v4905_v60 = vld [vmem:[#allocation2 + $0x1e8] sm:$0xff]  }
 0x361   :  { %v2126_v30 = vadd.f32 %v2125_v42, %v2111_v34  ;;  %4698 = vmatpush3.bf16.xpose.msra.mxu1 %v3168_v23 }
 0x362   :  { %4699 = vmatprep.subr.bf16.mxu1 %v3167_v48 }
 0x363   :  { %v2127_v9 = vadd.f32 %v2126_v30, %v2112_v25  ;;  %v4906_v25 = vld [vmem:[#allocation2 + $0x1f0] sm:$0xff]  }
 0x365   :  { %v2128_v52 = vadd.f32 %v2127_v9, %v2113_v19 }
 0x367   :  { %v2129_v63 = vrot.slane %v2128_v52, 4 }
 0x369   :  { %v2130_v54 = vadd.f32 %v2129_v63, %v2128_v52  ;;  %4700 = vmatpush3.bf16.xpose.msra.mxu1 %v3167_v48 }
 0x36a   :  { %4701 = vmatprep.subr.bf16.mxu1 %v5513_v62 }
 0x36b   :  { %v2131_v50 = vrot.slane %v2130_v54, 2 }
 0x36d   :  { %v2132_v11 = vadd.f32 %v2131_v50, %v2130_v54  ;;  %v4907_v50 = vld [vmem:[#allocation2 + $0x1f8] sm:$0xff]  }
 0x36f   :  { %v2133_v57 = vrot.slane %v2132_v11, 1 }
 0x371   :  { %v2134_v18 = vadd.f32 %v2133_v57, %v2132_v11  ;;  %4702 = vmatpush3.bf16.xpose.msra.mxu1 %v5513_v62 }
 0x372   :  { %4703 = vmatprep.subr.bf16.mxu1 %v5515_v51 }
 0x373   :  { %v5689_v40 = vsel %vm3307_vm0, %v1928_v16, %v2134_v18 }
 0x379   :  { %4704 = vmatpush3.bf16.xpose.msra.mxu1 %v5515_v51 }
 0x380   :  { %v4547_v31 = vpop.f32.mrf.mxu1  ;;  %4706 = vmatmul.mubr.bf16.vlgmr.msra.gmra.mxu1 %v4901_v38 }
 0x381   :  { %4709 = vmatprep.mubr.bf16.mxu1 %v4902_v10  ;;  %v2306_v20 = vmul.f32 %v4547_v31, %v5562_v6 }
 0x382   :  { %v2241_v61 = vpop.f32.mrf.mxu1 }
 0x383   :  { %v2304_v15 = vmul.f32 %v5553_v7, %v2241_v61 }
 0x384   :  { %v4548_v12 = vpop.f32.mrf.mxu1 }
 0x385   :  { %v2307_v51 = vmul.f32 %v4548_v12, %v5569_v29 }
 0x386   :  { %v2244_v56 = vpop.f32.mrf.mxu1 }
 0x387   :  { %v2305_v4 = vmul.f32 %v5557_v45, %v2244_v56 }
 0x388   :  { %v4551_v35 = vpop.f32.mrf.mxu1  ;;  %4710 = vmatmul.mubr.bf16.gmra.mxu1 %v4903_v13 }
 0x389   :  { %v2320_v62 = vadd.f32 %v2305_v4, %v2304_v15  ;;  %4713 = vmatprep.mubr.bf16.mxu1 %v4904_v2  ;;  %v2310_v33 = vmul.f32 %v4551_v35, %v5589_v39 }
 0x38a   :  { %v2257_v5 = vpop.f32.mrf.mxu1 }
 0x38b   :  { %v2321_v21 = vadd.f32 %v2320_v62, %v2306_v20  ;;  %v2308_v3 = vmul.f32 %v5575_v46, %v2257_v5 }
 0x38c   :  { %v4552_v23 = vpop.f32.mrf.mxu1 }
 0x38d   :  { %v2322_v27 = vadd.f32 %v2321_v21, %v2307_v51  ;;  %v2311_v34 = vmul.f32 %v4552_v23, %v5597_v41 }
 0x38e   :  { %v2260_v58 = vpop.f32.mrf.mxu1 }
 0x38f   :  { %v2323_v28 = vadd.f32 %v2322_v27, %v2308_v3  ;;  %v2309_v8 = vmul.f32 %v5583_v44, %v2260_v58 }
 0x390   :  { %v4555_v22 = vpop.f32.mrf.mxu1  ;;  %4714 = vmatmul.mubr.bf16.gmra.mxu1 %v4905_v60 }
 0x391   :  { %v2324_v43 = vadd.f32 %v2323_v28, %v2309_v8  ;;  %4717 = vmatprep.mubr.bf16.mxu1 %v4906_v25  ;;  %v2314_v47 = vmul.f32 %v4555_v22, %v5619_v17 }
 0x392   :  { %v2273_v42 = vpop.f32.mrf.mxu1 }
 0x393   :  { %v2325_v53 = vadd.f32 %v2324_v43, %v2310_v33  ;;  %v2312_v48 = vmul.f32 %v5603_v26, %v2273_v42 }
 0x394   :  { %v4556_v30 = vpop.f32.mrf.mxu1 }
 0x395   :  { %v2326_v19 = vadd.f32 %v2325_v53, %v2311_v34  ;;  %v2315_v11 = vmul.f32 %v4556_v30, %v5627_v49 }
 0x396   :  { %v2276_v9 = vpop.f32.mrf.mxu1 }
 0x397   :  { %v2327_v36 = vadd.f32 %v2326_v19, %v2312_v48  ;;  %v2313_v52 = vmul.f32 %v5613_v59, %v2276_v9  ;;  %v5719_v9 = vpop.f32.mrf.mxu0 }
 0x398   :  { %v4559_v63 = vpop.f32.mrf.mxu1  ;;  %4718 = vmatmul.mubr.bf16.gmra.mxu1 %v4907_v50 }
 0x399   :  { %v2328_v54 = vadd.f32 %v2327_v36, %v2313_v52  ;;  %v2318_v12 = vmul.f32 %v4559_v63, %v5649_v14 }
 0x39a   :  { %v2289_v1 = vpop.f32.mrf.mxu1 }
 0x39b   :  { %v2329_v57 = vadd.f32 %v2328_v54, %v2314_v47  ;;  %v2316_v18 = vmul.f32 %v5633_v32, %v2289_v1  ;;  %v5723_v1 = vpop.f32.mrf.mxu0 }
 0x39c   :  { %v4560_v16 = vpop.f32.mrf.mxu1 }
 0x39d   :  { %v2330_v31 = vadd.f32 %v2329_v57, %v2315_v11  ;;  %v2319_v15 = vmul.f32 %v4560_v16, %v5653_v55 }
 0x39e   :  { %v2292_v38 = vpop.f32.mrf.mxu1 }
 0x39f   :  { %v2331_v61 = vadd.f32 %v2330_v31, %v2316_v18  ;;  %v2317_v10 = vmul.f32 %v5644_v24, %v2292_v38 }
 0x3a1   :  { %v2332_v56 = vadd.f32 %v2331_v61, %v2317_v10  ;;  %v5727_v61 = vpop.f32.mrf.mxu0 }
 0x3a3   :  { %v2333_v4 = vadd.f32 %v2332_v56, %v2318_v12 }
 0x3a5   :  { %v2334_v35 = vadd.f32 %v2333_v4, %v2319_v15 }
 0x3a7   :  { %v2335_v20 = vrot.slane %v2334_v35, 4 }
 0x3a9   :  { %v2336_v62 = vadd.f32 %v2335_v20, %v2334_v35  ;;  %v5731_v20 = vpop.f32.mrf.mxu0 }
 0x3ab   :  { %v2337_v13 = vrot.slane %v2336_v62, 2 }
 0x3ad   :  { %v2338_v5 = vadd.f32 %v2337_v13, %v2336_v62  ;;  %v3343_v13 = vld [vmem:[#allocation8 + $0x78] sm:$0xff] }
 0x3ae   :  { %4722 = vmatpush3.msra.mxu0 %v3343_v13  ;;  %v3329_v13 = vld [vmem:[#allocation8 + $0x8] sm:$0xff] }
 0x3af   :  { %v2339_v51 = vrot.slane %v2338_v5, 1  ;;  %4723 = vmatprep.subr.mxu0 %v4999_v0 }
 0x3b1   :  { %v2340_v21 = vadd.f32 %v2339_v51, %v2338_v5  ;;  %v3342_v5 = vld [vmem:[#allocation8 + $0x70] sm:$0xff] }
 0x3b2   :  { %4724 = vmatpush3.msra.mxu0 %v3342_v5 }
 0x3b3   :  { %v5711_v2 = vsel %vm3309_vm2, %v5689_v40, %v2340_v21  ;;  %4725 = vmatprep.subr.mxu0 %v4999_v0 }
 0x3c0   :  { %v4579_v23 = vpop.f32.mrf.mxu1 }
 0x3c1   :  { %v2512_v33 = vmul.f32 %v4579_v23, %v5562_v6 }
 0x3c2   :  { %v2447_v3 = vpop.f32.mrf.mxu1 }
 0x3c3   :  { %v2510_v28 = vmul.f32 %v5553_v7, %v2447_v3 }
 0x3c4   :  { %v4580_v27 = vpop.f32.mrf.mxu1 }
 0x3c5   :  { %v2513_v42 = vmul.f32 %v4580_v27, %v5569_v29 }
 0x3c6   :  { %v2450_v58 = vpop.f32.mrf.mxu1 }
 0x3c7   :  { %v2511_v8 = vmul.f32 %v5557_v45, %v2450_v58  ;;  %v5736_v58 = vpop.f32.mrf.mxu0 }
 0x3c8   :  { %v4583_v22 = vpop.f32.mrf.mxu1 }
 0x3c9   :  { %v2526_v43 = vadd.f32 %v2511_v8, %v2510_v28  ;;  %v2516_v52 = vmul.f32 %v4583_v22, %v5589_v39  ;;  %v3341_v28 = vld [vmem:[#allocation8 + $0x68] sm:$0xff]  ;;  %v3340_v8 = vld [vmem:[#allocation8 + $0x60] sm:$0xff] }
 0x3ca   :  { %v2463_v60 = vpop.f32.mrf.mxu1  ;;  %4726 = vmatpush3.msra.mxu0 %v3341_v28 }
 0x3cb   :  { %v2527_v34 = vadd.f32 %v2526_v43, %v2512_v33  ;;  %v2514_v40 = vmul.f32 %v5575_v46, %v2463_v60  ;;  %4727 = vmatprep.subr.mxu0 %v4999_v0 }
 0x3cc   :  { %v4584_v53 = vpop.f32.mrf.mxu1  ;;  %4728 = vmatpush3.msra.mxu0 %v3340_v8 }
 0x3cd   :  { %v2528_v25 = vadd.f32 %v2527_v34, %v2513_v42  ;;  %v2517_v54 = vmul.f32 %v4584_v53, %v5597_v41  ;;  %v5742_v42 = vpop.f32.mrf.mxu0  ;;  %4729 = vmatprep.subr.mxu0 %v4999_v0 }
 0x3ce   :  { %v2466_v30 = vpop.f32.mrf.mxu1 }
 0x3cf   :  { %v2529_v48 = vadd.f32 %v2528_v25, %v2514_v40  ;;  %v2515_v19 = vmul.f32 %v5583_v44, %v2466_v30  ;;  %v5745_v40 = vpop.f32.mrf.mxu0 }
 0x3d0   :  { %v4587_v36 = vpop.f32.mrf.mxu1 }
 0x3d1   :  { %v2530_v63 = vadd.f32 %v2529_v48, %v2515_v19  ;;  %v2520_v12 = vmul.f32 %v4587_v36, %v5619_v17  ;;  %v5747_v48 = vpop.f32.mrf.mxu0 }
 0x3d2   :  { %v2479_v47 = vpop.f32.mrf.mxu1 }
 0x3d3   :  { %v2531_v50 = vadd.f32 %v2530_v63, %v2516_v52  ;;  %v2518_v57 = vmul.f32 %v5603_v26, %v2479_v47  ;;  %v5749_v52 = vpop.f32.mrf.mxu0 }
 0x3d4   :  { %v4588_v11 = vpop.f32.mrf.mxu1 }
 0x3d5   :  { %v2532_v16 = vadd.f32 %v2531_v50, %v2517_v54  ;;  %v2521_v4 = vmul.f32 %v4588_v11, %v5627_v49  ;;  %v5754_v54 = vpop.f32.mrf.mxu0  ;;  %v3339_v50 = vld [vmem:[#allocation8 + $0x58] sm:$0xff]  ;;  %v3338_v11 = vld [vmem:[#allocation8 + $0x50] sm:$0xff] }
 0x3d6   :  { %v2482_v18 = vpop.f32.mrf.mxu1  ;;  %4730 = vmatpush3.msra.mxu0 %v3339_v50 }
 0x3d7   :  { %v2533_v31 = vadd.f32 %v2532_v16, %v2518_v57  ;;  %v2519_v38 = vmul.f32 %v5613_v59, %v2482_v18  ;;  %4731 = vmatprep.subr.mxu0 %v4999_v0  ;;  %v3337_v57 = vld [vmem:[#allocation8 + $0x48] sm:$0xff]  ;;  %v5757_v16 = vpop.f32.mrf.mxu0  ;;  %v3336_v18 = vld [vmem:[#allocation8 + $0x40] sm:$0xff] }
 0x3d8   :  { %v4591_v10 = vpop.f32.mrf.mxu1  ;;  %4732 = vmatpush3.msra.mxu0 %v3338_v11 }
 0x3d9   :  { %v2534_v56 = vadd.f32 %v2533_v31, %v2519_v38  ;;  %v2524_v22 = vmul.f32 %v4591_v10, %v5649_v14  ;;  %4733 = vmatprep.subr.mxu0 %v4999_v0  ;;  %v3335_v31 = vld [vmem:[#allocation8 + $0x38] sm:$0xff]  ;;  %v3334_v38 = vld [vmem:[#allocation8 + $0x30] sm:$0xff]  ;;  %v3333_v10 = vld [vmem:[#allocation8 + $0x28] sm:$0xff] }
 0x3da   :  { %v2495_v15 = vpop.f32.mrf.mxu1  ;;  %4734 = vmatpush3.msra.mxu0 %v3337_v57  ;;  %v2718_v57 = vmul.f32 %v5719_v9, %v5562_v6 }
 0x3db   :  { %v2535_v35 = vadd.f32 %v2534_v56, %v2520_v12  ;;  %v2522_v51 = vmul.f32 %v5633_v32, %v2495_v15  ;;  %4735 = vmatprep.subr.mxu0 %v4999_v0  ;;  %v3332_v56 = vld [vmem:[#allocation8 + $0x20] sm:$0xff]  ;;  %v3331_v15 = vld [vmem:[#allocation8 + $0x18] sm:$0xff] }
 0x3dc   :  { %v4592_v62 = vpop.f32.mrf.mxu1  ;;  %4736 = vmatpush3.msra.mxu0 %v3336_v18 }
 0x3dd   :  { %v2536_v21 = vadd.f32 %v2535_v35, %v2521_v4  ;;  %v2525_v43 = vmul.f32 %v4592_v62, %v5653_v55  ;;  %4737 = vmatprep.subr.mxu0 %v4999_v0  ;;  %v3330_v62 = vld [vmem:[#allocation8 + $0x10] sm:$0xff] }
 0x3de   :  { %v2498_v23 = vpop.f32.mrf.mxu1  ;;  %4738 = vmatpush3.msra.mxu0 %v3335_v31 }
 0x3df   :  { %v2537_v3 = vadd.f32 %v2536_v21, %v2522_v51  ;;  %v2523_v27 = vmul.f32 %v5644_v24, %v2498_v23  ;;  %4739 = vmatprep.subr.mxu0 %v4999_v0  ;;  %v3328_v21 = vld [vmem:[#allocation8] sm:$0xff] }
 0x3e0   :  { %4740 = vmatpush3.msra.mxu0 %v3334_v38 }
 0x3e1   :  { %v2538_v33 = vadd.f32 %v2537_v3, %v2523_v27  ;;  %4741 = vmatprep.subr.mxu0 %v4999_v0 }
 0x3e2   :  { %4742 = vmatpush3.msra.mxu0 %v3333_v10 }
 0x3e3   :  { %v2539_v60 = vadd.f32 %v2538_v33, %v2524_v22  ;;  %4743 = vmatprep.subr.mxu0 %v4999_v0 }
 0x3e4   :  { %4744 = vmatpush3.msra.mxu0 %v3332_v56 }
 0x3e5   :  { %v2540_v34 = vadd.f32 %v2539_v60, %v2525_v43  ;;  %4745 = vmatprep.subr.mxu0 %v4999_v0 }
 0x3e6   :  { %4746 = vmatpush3.msra.mxu0 %v3331_v15  ;;  %v2719_v15 = vmul.f32 %v5727_v61, %v5569_v29  ;;  %v2721_v61 = vmul.f32 %v5583_v44, %v5747_v48 }
 0x3e7   :  { %v2541_v53 = vrot.slane %v2540_v34, 4  ;;  %4747 = vmatprep.subr.mxu0 %v4999_v0 }
 0x3e8   :  { %4748 = vmatpush3.msra.mxu0 %v3330_v62 }
 0x3e9   :  { %v2542_v25 = vadd.f32 %v2541_v53, %v2540_v34  ;;  %4749 = vmatprep.subr.mxu0 %v4999_v0  ;;  %v2717_v34 = vmul.f32 %v5557_v45, %v5731_v20 }
 0x3ea   :  { %4750 = vmatpush3.msra.mxu0 %v3329_v13 }
 0x3eb   :  { %v2543_v30 = vrot.slane %v2542_v25, 2  ;;  %4751 = vmatprep.subr.mxu0 %v4999_v0  ;;  %v2716_v0 = vmul.f32 %v5553_v7, %v5723_v1 }
 0x3ec   :  { %4752 = vmatpush3.msra.mxu0 %v3328_v21 }
 0x3ed   :  { %v2544_v19 = vadd.f32 %v2543_v30, %v2542_v25 }
 0x3ef   :  { %v2545_v36 = vrot.slane %v2544_v19, 1 }
 0x3f1   :  { %v2546_v63 = vadd.f32 %v2545_v36, %v2544_v19  ;;  %v2732_v36 = vadd.f32 %v2717_v34, %v2716_v0 }
 0x3f3   :  { %v5752_v47 = vsel %vm3311_vm3, %v5711_v2, %v2546_v63  ;;  %v5761_v2 = vpop.f32.mrf.mxu0  ;;  %v2733_v38 = vadd.f32 %v2732_v36, %v2718_v57 }
 0x3f5   :  { %v5765_v12 = vpop.f32.mrf.mxu0 }
 0x3f7   :  { %v5769_v35 = vpop.f32.mrf.mxu0 }
 0x3f9   :  { %v5773_v51 = vpop.f32.mrf.mxu0 }
 0x3fb   :  { %v5777_v3 = vpop.f32.mrf.mxu0 }
 0x3fd   :  { %v4675_v27 = vpop.f32.mrf.mxu0 }
 0x3fe   :  { %v3130_v62 = vmul.f32 %v4675_v27, %v5562_v6 }
 0x3ff   :  { %v3065_v8 = vpop.f32.mrf.mxu0 }
 0x400   :  { %v4643_v4 = vpop.f32.mrf.mxu1  ;;  %v3128_v18 = vmul.f32 %v5553_v7, %v3065_v8  ;;  %v2720_v8 = vmul.f32 %v5575_v46, %v5742_v42 }
 0x401   :  { %v4676_v33 = vpop.f32.mrf.mxu0  ;;  %v2924_v11 = vmul.f32 %v4643_v4, %v5562_v6  ;;  %v2734_v4 = vadd.f32 %v2733_v38, %v2719_v15 }
 0x402   :  { %v2859_v5 = vpop.f32.mrf.mxu1 }
 0x403   :  { %v3068_v53 = vpop.f32.mrf.mxu0  ;;  %v2922_v25 = vmul.f32 %v5553_v7, %v2859_v5 }
 0x404   :  { %v4644_v23 = vpop.f32.mrf.mxu1  ;;  %v3129_v63 = vmul.f32 %v5557_v45, %v3068_v53 }
 0x405   :  { %v4679_v50 = vpop.f32.mrf.mxu0  ;;  %v2925_v1 = vmul.f32 %v4644_v23, %v5569_v29 }
 0x406   :  { %v2862_v28 = vpop.f32.mrf.mxu1  ;;  %v3144_v10 = vadd.f32 %v3129_v63, %v3128_v18  ;;  %v2722_v18 = vmul.f32 %v5736_v58, %v5589_v39  ;;  %v3134_v15 = vmul.f32 %v4679_v50, %v5589_v39  ;;  %v2725_v50 = vmul.f32 %v5613_v59, %v5761_v2 }
 0x407   :  { %v2923_v60 = vmul.f32 %v5557_v45, %v2862_v28  ;;  %v3081_v56 = vpop.f32.mrf.mxu0 }
 0x408   :  { %v4647_v22 = vpop.f32.mrf.mxu1  ;;  %v3145_v21 = vadd.f32 %v3144_v10, %v3130_v62 }
 0x409   :  { %v2938_v19 = vadd.f32 %v2923_v60, %v2922_v25  ;;  %v4680_v28 = vpop.f32.mrf.mxu0  ;;  %v3131_v60 = vmul.f32 %v4676_v33, %v5569_v29  ;;  %v2735_v25 = vadd.f32 %v2734_v4, %v2720_v8  ;;  %v2928_v33 = vmul.f32 %v4647_v22, %v5589_v39 }
 0x40a   :  { %v2875_v43 = vpop.f32.mrf.mxu1  ;;  %v3135_v8 = vmul.f32 %v4680_v28, %v5597_v41 }
 0x40b   :  { %v2939_v31 = vadd.f32 %v2938_v19, %v2924_v11  ;;  %v2926_v9 = vmul.f32 %v5575_v46, %v2875_v43  ;;  %v3146_v27 = vadd.f32 %v3145_v21, %v3131_v60  ;;  %v3084_v0 = vpop.f32.mrf.mxu0  ;;  %v3132_v19 = vmul.f32 %v5575_v46, %v3081_v56 }
 0x40c   :  { %v4648_v30 = vpop.f32.mrf.mxu1  ;;  %v2736_v43 = vadd.f32 %v2735_v25, %v2721_v61  ;;  %v3133_v42 = vmul.f32 %v5583_v44, %v3084_v0  ;;  %v2723_v56 = vmul.f32 %v5745_v40, %v5597_v41 }
 0x40d   :  { %v2940_v5 = vadd.f32 %v2939_v31, %v2925_v1  ;;  %v3147_v11 = vadd.f32 %v3146_v27, %v3132_v19  ;;  %v4683_v57 = vpop.f32.mrf.mxu0  ;;  %v2929_v1 = vmul.f32 %v4648_v30, %v5597_v41 }
 0x40e   :  { %v2878_v20 = vpop.f32.mrf.mxu1  ;;  %v2737_v38 = vadd.f32 %v2736_v43, %v2722_v18  ;;  %v2726_v43 = vmul.f32 %v5749_v52, %v5619_v17 }
 0x40f   :  { %v2941_v53 = vadd.f32 %v2940_v5, %v2926_v9  ;;  %v2927_v23 = vmul.f32 %v5583_v44, %v2878_v20  ;;  %v3148_v48 = vadd.f32 %v3147_v11, %v3133_v42  ;;  %v3097_v10 = vpop.f32.mrf.mxu0  ;;  %v2724_v9 = vmul.f32 %v5603_v26, %v5754_v54 }
 0x410   :  { %v4651_v13 = vpop.f32.mrf.mxu1  ;;  %v2738_v4 = vadd.f32 %v2737_v38, %v2723_v56  ;;  %v3136_v61 = vmul.f32 %v5603_v26, %v3097_v10  ;;  %v2727_v38 = vmul.f32 %v5757_v16, %v5627_v49 }
 0x411   :  { %v2942_v63 = vadd.f32 %v2941_v53, %v2927_v23  ;;  %v3149_v22 = vadd.f32 %v3148_v48, %v3134_v15  ;;  %v4684_v21 = vpop.f32.mrf.mxu0  ;;  %v2932_v28 = vmul.f32 %v4651_v13, %v5619_v17  ;;  %v3138_v48 = vmul.f32 %v4683_v57, %v5619_v17 }
 0x412   :  { %v2891_v34 = vpop.f32.mrf.mxu1  ;;  %v2739_v40 = vadd.f32 %v2738_v4, %v2724_v9  ;;  %v2728_v4 = vmul.f32 %v5633_v32, %v5769_v35 }
 0x413   :  { %v2943_v31 = vadd.f32 %v2942_v63, %v2928_v33  ;;  %v2930_v58 = vmul.f32 %v5603_v26, %v2891_v34  ;;  %v3150_v23 = vadd.f32 %v3149_v22, %v3135_v8  ;;  %v3100_v25 = vpop.f32.mrf.mxu0  ;;  %v3139_v22 = vmul.f32 %v4684_v21, %v5627_v49 }
 0x414   :  { %v4652_v36 = vpop.f32.mrf.mxu1  ;;  %v2740_v34 = vadd.f32 %v2739_v40, %v2725_v50  ;;  %v3137_v54 = vmul.f32 %v5613_v59, %v3100_v25 }
 0x415   :  { %v2944_v5 = vadd.f32 %v2943_v31, %v2929_v1  ;;  %v3151_v19 = vadd.f32 %v3150_v23, %v3136_v61  ;;  %v4687_v63 = vpop.f32.mrf.mxu0  ;;  %v2933_v31 = vmul.f32 %v4652_v36, %v5627_v49 }
 0x416   :  { %v2894_v20 = vpop.f32.mrf.mxu1  ;;  %v2741_v33 = vadd.f32 %v2740_v34, %v2726_v43 }
 0x417   :  { %v2945_v30 = vadd.f32 %v2944_v5, %v2930_v58  ;;  %v2931_v53 = vmul.f32 %v5613_v59, %v2894_v20  ;;  %v3152_v2 = vadd.f32 %v3151_v19, %v3137_v54  ;;  %v3113_v20 = vpop.f32.mrf.mxu0 }
 0x418   :  { %v5810_v62 = vpop.f32.mrf.mxu1  ;;  %v2742_v56 = vadd.f32 %v2741_v33, %v2727_v38  ;;  %v3140_v21 = vmul.f32 %v5633_v32, %v3113_v20 }
 0x419   :  { %v2946_v0 = vadd.f32 %v2945_v30, %v2931_v53  ;;  %v3153_v13 = vadd.f32 %v3152_v2, %v3138_v48  ;;  %v4688_v5 = vpop.f32.mrf.mxu0  ;;  %v2729_v30 = vmul.f32 %v5644_v24, %v5777_v3  ;;  %v2936_v3 = vmul.f32 %v5810_v62, %v5649_v14 }
 0x41a   :  { %v2907_v60 = vpop.f32.mrf.mxu1  ;;  %v2743_v8 = vadd.f32 %v2742_v56, %v2728_v4  ;;  %v3142_v62 = vmul.f32 %v4687_v63, %v5649_v14 }
 0x41b   :  { %v2947_v42 = vadd.f32 %v2946_v0, %v2932_v28  ;;  %v2934_v52 = vmul.f32 %v5633_v32, %v2907_v60  ;;  %v3154_v53 = vadd.f32 %v3153_v13, %v3139_v22  ;;  %v3116_v60 = vpop.f32.mrf.mxu0 }
 0x41c   :  { %v4656_v27 = vpop.f32.mrf.mxu1 }
 0x41d   :  { %v2948_v1 = vadd.f32 %v2947_v42, %v2933_v31  ;;  %v3155_v34 = vadd.f32 %v3154_v53, %v3140_v21  ;;  %v2937_v20 = vmul.f32 %v4656_v27, %v5653_v55  ;;  %v3143_v27 = vmul.f32 %v4688_v5, %v5653_v55 }
 0x41e   :  { %v2910_v11 = vpop.f32.mrf.mxu1 }
 0x41f   :  { %v2949_v36 = vadd.f32 %v2948_v1, %v2934_v52  ;;  %v2935_v9 = vmul.f32 %v5644_v24, %v2910_v11 }
 0x421   :  { %v2950_v25 = vadd.f32 %v2949_v36, %v2935_v9 }
 0x423   :  { %v2951_v11 = vadd.f32 %v2950_v25, %v2936_v3 }
 0x440   :  { %v4707_v18 = vpop.f32.mrf.mxu1 }
 0x441   :  { %v3272_v50 = vmul.f32 %v4707_v18, %v5562_v6  ;;  %v2730_v6 = vmul.f32 %v5765_v12, %v5649_v14  ;;  %v2952_v12 = vadd.f32 %v2951_v11, %v2937_v20 }
 0x442   :  { %v3207_v10 = vpop.f32.mrf.mxu1 }
 0x443   :  { %v3270_v16 = vmul.f32 %v5553_v7, %v3207_v10  ;;  %v2744_v7 = vadd.f32 %v2743_v8, %v2729_v30  ;;  %v2953_v4 = vrot.slane %v2952_v12, 4 }
 0x444   :  { %v4708_v15 = vpop.f32.mrf.mxu1 }
 0x445   :  { %v3273_v61 = vmul.f32 %v4708_v15, %v5569_v29  ;;  %v2745_v33 = vadd.f32 %v2744_v7, %v2730_v6 }
 0x446   :  { %v3210_v58 = vpop.f32.mrf.mxu1 }
 0x447   :  { %v3271_v57 = vmul.f32 %v5557_v45, %v3210_v58  ;;  %v3141_v45 = vmul.f32 %v5644_v24, %v3116_v60 }
 0x448   :  { %v4711_v40 = vpop.f32.mrf.mxu1 }
 0x449   :  { %v3286_v35 = vadd.f32 %v3271_v57, %v3270_v16  ;;  %v3156_v2 = vadd.f32 %v3155_v34, %v3141_v45  ;;  %v3276_v31 = vmul.f32 %v4711_v40, %v5589_v39  ;;  %v2954_v57 = vadd.f32 %v2953_v4, %v2952_v12 }
 0x44a   :  { %v3223_v23 = vpop.f32.mrf.mxu1 }
 0x44b   :  { %v3287_v0 = vadd.f32 %v3286_v35, %v3272_v50  ;;  %v3274_v54 = vmul.f32 %v5575_v46, %v3223_v23  ;;  %v2731_v46 = vmul.f32 %v5773_v51, %v5653_v55  ;;  %v2955_v35 = vrot.slane %v2954_v57, 2 }
 0x44c   :  { %v4712_v19 = vpop.f32.mrf.mxu1 }
 0x44d   :  { %v3288_v28 = vadd.f32 %v3287_v0, %v3273_v61  ;;  %v3277_v10 = vmul.f32 %v4712_v19, %v5597_v41  ;;  %v2746_v56 = vadd.f32 %v2745_v33, %v2731_v46  ;;  %v2956_v0 = vadd.f32 %v2955_v35, %v2954_v57  ;;  %v3597_v33 = vld [vmem:[#allocation8 + $0x80] ss:$0 sm:$0xff] }
 0x44e   :  { %v3226_v43 = vpop.f32.mrf.mxu1 }
 0x44f   :  { %v3289_v42 = vadd.f32 %v3288_v28, %v3274_v54  ;;  %v3275_v29 = vmul.f32 %v5583_v44, %v3226_v43  ;;  %v3157_v44 = vadd.f32 %v3156_v2, %v3142_v62  ;;  %v2747_v58 = vrot.slane %v2746_v56, 4 }
 0x450   :  { %v4715_v18 = vpop.f32.mrf.mxu1  ;;  %v2957_v3 = vrot.slane %v2956_v0, 1 }
 0x451   :  { %v3290_v38 = vadd.f32 %v3289_v42, %v3275_v29  ;;  %v3158_v63 = vadd.f32 %v3157_v44, %v3143_v27  ;;  %v3280_v9 = vmul.f32 %v4715_v18, %v5619_v17 }
 0x452   :  { %v3239_v48 = vpop.f32.mrf.mxu1  ;;  %v2958_v43 = vadd.f32 %v2957_v3, %v2956_v0 }
 0x453   :  { %v3291_v1 = vadd.f32 %v3290_v38, %v3276_v31  ;;  %v3278_v15 = vmul.f32 %v5603_v26, %v3239_v48  ;;  %v2748_v26 = vadd.f32 %v2747_v58, %v2746_v56  ;;  %v3159_v53 = vrot.slane %v3158_v63, 4  ;;  %v3598_v48 = vld [vmem:[#allocation8 + $0x90] ss:$0 sm:$0xff] }
 0x454   :  { %v4716_v13 = vpop.f32.mrf.mxu1  ;;  %v3326_v31 = vadd.f32 %v3597_v33, %v5360_v37 }
 0x455   :  { %v3292_v52 = vadd.f32 %v3291_v1, %v3277_v10  ;;  %v3281_v8 = vmul.f32 %v4716_v13, %v5627_v49  ;;  %v2749_v23 = vrot.slane %v2748_v26, 2  ;;  %v3160_v25 = vadd.f32 %v3159_v53, %v3158_v63 }
 0x456   :  { %v3242_v39 = vpop.f32.mrf.mxu1 }
 0x457   :  { %v3293_v22 = vadd.f32 %v3292_v52, %v3278_v15  ;;  %v3279_v51 = vmul.f32 %v5613_v59, %v3242_v39  ;;  %v2750_v34 = vadd.f32 %v2749_v23, %v2748_v26  ;;  %v3161_v45 = vrot.slane %v3160_v25, 2 }
 0x458   :  { %v4719_v36 = vpop.f32.mrf.mxu1 }
 0x459   :  { %v3294_v41 = vadd.f32 %v3293_v22, %v3279_v51  ;;  %v3284_v17 = vmul.f32 %v4719_v36, %v5649_v14  ;;  %v2751_v54 = vrot.slane %v2750_v34, 1  ;;  %v3162_v28 = vadd.f32 %v3161_v45, %v3160_v25 }
 0x45a   :  { %v3255_v16 = vpop.f32.mrf.mxu1 }
 0x45b   :  { %v3295_v30 = vadd.f32 %v3294_v41, %v3280_v9  ;;  %v3282_v5 = vmul.f32 %v5633_v32, %v3255_v16  ;;  %v2752_v11 = vadd.f32 %v2751_v54, %v2750_v34  ;;  %v3163_v42 = vrot.slane %v3162_v28, 1 }
 0x45c   :  { %v4720_v40 = vpop.f32.mrf.mxu1 }
 0x45d   :  { %v3296_v60 = vadd.f32 %v3295_v30, %v3281_v8  ;;  %v3285_v49 = vmul.f32 %v4720_v40, %v5653_v55  ;;  %v3314_v29 = vsel %vm3313_vm4, %v5752_v47, %v2752_v11  ;;  %v3164_v18 = vadd.f32 %v3163_v42, %v3162_v28 }
 0x45e   :  { %v3258_v50 = vpop.f32.mrf.mxu1  ;;  %v3316_v55 = vsel %vm3315_vm5, %v3314_v29, %v2958_v43 }
 0x45f   :  { %v3297_v59 = vadd.f32 %v3296_v60, %v3282_v5  ;;  %v3283_v21 = vmul.f32 %v5644_v24, %v3258_v50  ;;  %v3318_v38 = vsel %vm3317_vm6, %v3316_v55, %v3164_v18 }
 0x461   :  { %v3298_v61 = vadd.f32 %v3297_v59, %v3283_v21 }
 0x463   :  { %v3299_v7 = vadd.f32 %v3298_v61, %v3284_v17 }
 0x465   :  { %v3300_v19 = vadd.f32 %v3299_v7, %v3285_v49 }
 0x467   :  { %v3301_v32 = vrot.slane %v3300_v19, 4 }
 0x469   :  { %v3302_v6 = vadd.f32 %v3301_v32, %v3300_v19 }
 0x46b   :  { %v3303_v24 = vrot.slane %v3302_v6, 2 }
 0x46d   :  { %v3304_v14 = vadd.f32 %v3303_v24, %v3302_v6 }
 0x46f   :  { %v3305_v2 = vrot.slane %v3304_v14, 1 }
 0x471   :  { %v3306_v20 = vadd.f32 %v3305_v2, %v3304_v14 }
 0x473   :  { %v3320_v46 = vsel %vm3319_vm7, %v3318_v38, %v3306_v20 }
 0x474   :  { %v3327_v62 = vadd.f32 %v3326_v31, %v3320_v46 }
 0x476   :  { %4754 = vmatmul.mubr.f32.vlgmr.msra.gmra.mxu0 %v3327_v62 }
 0x536   :  { %v3415_v12 = vpop.f32.mrf.mxu0 }
 0x537   :  { %v3416_v10 = vadd.f32 %v3598_v48, %v3415_v12 }
 0x538   :  { %v4755_v47 = vpop.f32.mrf.mxu0 }
 0x539   :  { %3419 = vst [vmem:[#allocation9] sm:$0xff] %v3416_v10 }
 0x53a   :  { %4979 = shalt.err (!%p4976_p5)
}
 0x53b   :  { %3429 = dma.vmem_to_hbm [thread:$0]  %s3427_s2, 128, %s5870_s3, [#allocation5]  }
 0x53c   :  { %4992 = dma.done.wait [#allocation5], 128  }
 0x53d   :  { %4993 = vsyncadd [#allocation5], 4294967168 }
 0x53e   :  { %3433 = vsyncpa [#allocation4], 1 }
 0x53f   :  { %3434 = vsyncpa [#allocation7], 1 }
 0x540   :  { %3435 = vsyncpa [#allocation5], 1 }

</bundles_post_ra>
